<compile_context>
chip_gen: v7x
topology: tpu7x:2x2x1
jax: 0.10.0
libtpu: 0.0.40
codegen_flags: <defaults>
</compile_context>

<pallas_src>
import functools
import math

import jax
import jax.numpy as jnp
from jax import lax
from jax.experimental import pallas as pl
from jax.experimental.pallas import tpu as pltpu

D_MODEL = 32
N_HEADS = 4
D_K = D_MODEL // N_HEADS
D_FF = 64
EPS = 1e-6


def _layernorm(x, gamma, beta):
    # torch LayerNorm from the spec: mean over last dim, std with the unbiased
    # (n-1) divisor, eps added to std (not variance).  Exact reciprocal (EUP is
    # idle here, so this costs nothing and keeps numerics tight).
    mean = jnp.mean(x, axis=-1, keepdims=True)
    var = jnp.sum((x - mean) ** 2, axis=-1, keepdims=True) / (x.shape[-1] - 1)
    inv = pl.reciprocal(jnp.sqrt(var) + EPS, approx=False)
    return gamma * (x - mean) * inv + beta


def encoder_layer_kernel(x_ref, mask_ref,
                         a1_ref, b1_ref,
                         wqkv_ref, bqkv_ref, wo_ref, bo_ref,
                         a2_ref, b2_ref,
                         w1_ref, b1f_ref, w2_ref, b2f_ref,
                         o_ref, *, block_b, seq_len):
    S, D, h, dk = seq_len, D_MODEL, N_HEADS, D_K
    BB = block_b
    scale = 1.0 / math.sqrt(dk)

    # TODO(synk): dropout layers are identity (eval mode), no RNG needed.
    x = x_ref[...]                                   # [BB*S, D] token rows
    if x.dtype != jnp.float32:
        x = x.astype(jnp.float32)

    # Key-padding mask, hoisted once per block (exact reference semantics:
    # masked keys get score -1e9, any nonzero mask value keeps the key).
    keep = (mask_ref[...] != 0)[:, None, :]          # [BB, 1, S] bool

    # ---- sublayer 0: pre-LN -> fused QKV -> per-head attn -> one Wo matmul
    y = _layernorm(x, a1_ref[...], b1_ref[...])      # [BB*S, D]

    # Fused QKV projection: single [BB*S, D] x [D, 3D] matmul (PyTorch (out,in)
    # weight layout, contract over the shared `in` dimension).
    qkv = lax.dot_general(y, wqkv_ref[...], (((1,), (1,)), ((), ())),
                          preferred_element_type=jnp.float32) + bqkv_ref[...]
    qkv = qkv.reshape(BB, S, 3 * D)                  # free split of the row dim

    ctxs = []
    for hi in range(h):                              # static unroll, h = 4
        lo = hi * dk
        q_h = qkv[:, :, lo:lo + dk]                  # [BB, S, dk]
        k_h = qkv[:, :, D + lo:D + lo + dk]
        v_h = qkv[:, :, 2 * D + lo:2 * D + lo + dk]

        s_h = jnp.einsum('bqd,bkd->bqk', q_h, k_h,
                         preferred_element_type=jnp.float32) * scale
        s_h = jnp.where(keep, s_h, -1e9)
        m = jnp.max(s_h, axis=-1, keepdims=True)
        p = jnp.exp(s_h - m)
        p = p * pl.reciprocal(jnp.sum(p, axis=-1, keepdims=True), approx=False)
        ctxs.append(jnp.einsum('bqk,bkd->bqd', p, v_h,
                               preferred_element_type=jnp.float32))

    # One cheap lane concat (4 x dk = 32 lanes, fits one vreg) then a single
    # K=32 output-projection matmul — replaces 4 K=8 matmuls + 3 adds.
    ctx = jnp.concatenate(ctxs, axis=-1).reshape(BB * S, D)      # [BB*S, D]
    attn = lax.dot_general(ctx, wo_ref[...], (((1,), (1,)), ((), ())),
                           preferred_element_type=jnp.float32) + bo_ref[...]
    x1 = x + attn                                    # [BB*S, D]

    # ---- sublayer 1: pre-LN -> Linear/ReLU/Linear -> residual
    y2 = _layernorm(x1, a2_ref[...], b2_ref[...])
    hdn = lax.dot_general(y2, w1_ref[...], (((1,), (1,)), ((), ())),
                          preferred_element_type=jnp.float32) + b1f_ref[...]
    hdn = jnp.maximum(hdn, 0.0)
    ff = lax.dot_general(hdn, w2_ref[...], (((1,), (1,)), ((), ())),
                         preferred_element_type=jnp.float32) + b2f_ref[...]
    out = x1 + ff                                    # [BB*S, D]

    # Lane-dense output [BB, S*D] (last dim 256 = 2x128 unmasked writeback).
    # Repack via S static lane-sliced stores directly into o_ref — layout
    # plumbing only, no big concatenate temporary.
    out3 = out.reshape(BB, S, D)                     # free split of the row dim
    for s in range(S):
        o_ref[:, s * D:(s + 1) * D] = out3[:, s, :].astype(o_ref.dtype)


def _num_tensorcores():
    """Best-effort TensorCore count for the current chip (v7x has 2)."""
    try:
        d = jax.devices()[0]
        kind = (getattr(d, "device_kind", "") or "").lower()
        if "v7" in kind:
            return 2
        return int(getattr(d, "num_cores", 1) or 1)
    except Exception:
        return 1


def _pick_block_b(B, S, num_tc=1, max_rows=1024):
    """Sequences per grid step.

    v5e/v6e (1 TC): one fat step covering the whole batch when it fits the VMEM
    row budget — the grid is a serial loop there, extra steps only add ~0.35us
    each and halve the matmul M.  v7x (2 TCs): prefer the largest valid block
    that yields a block count divisible by the TC count so the "parallel" grid
    axis shards evenly.  Blocks must be B (full) or a multiple of 8 (tiling)."""
    cap = max(1, max_rows // max(S, 1))

    def ok(bb):
        return B % bb == 0 and (bb == B or bb % 8 == 0)

    if num_tc <= 1 and B <= cap:
        return B
    best = None
    for bb in range(min(cap, B), 0, -1):
        if not ok(bb):
            continue
        if best is None:
            best = bb
        if (B // bb) % max(num_tc, 1) == 0:
            return bb
    return best if best is not None else B


def encoder_layer(x, mask, params):
    B, S, D = x.shape
    assert D == D_MODEL

    # Wrapper-side layout plumbing (cheap reshapes of the same HBM bytes).
    x_rows = x.reshape(B * S, D)        # one row per token for the matmuls
    # Key-padding mask: (B, 1, S) or (B, S).
    # TODO(synk): a general (B, S, S) attention mask is not handled here.
    if mask.ndim == 3:
        assert mask.shape == (B, 1, S), mask.shape
        mask2 = mask.reshape(B, S)
    else:
        assert mask.shape == (B, S), mask.shape
        mask2 = mask

    # Host-side fused QKV parameters: one matmul instead of three.
    wqkv = jnp.concatenate([params["wq"], params["wk"], params["wv"]], axis=0)  # [3D, D]
    bqkv = jnp.concatenate([params["bq"], params["bk"], params["bv"]], axis=1)  # [1, 3D]

    block_b = _pick_block_b(B, S, num_tc=_num_tensorcores())
    assert B % block_b == 0
    grid = (B // block_b,)

    kernel = functools.partial(encoder_layer_kernel, block_b=block_b, seq_len=S)

    def full_spec(arr):
        nd = arr.ndim
        return pl.BlockSpec(arr.shape, lambda i, _nd=nd: (0,) * _nd)

    weights = [params["a1"], params["b1"], wqkv, bqkv, params["wo"], params["bo"],
               params["a2"], params["b2"], params["w1"], params["b1f"],
               params["w2"], params["b2f"]]

    in_specs = [
        pl.BlockSpec((block_b * S, D), lambda i: (i, 0)),   # token rows
        pl.BlockSpec((block_b, S), lambda i: (i, 0)),       # mask
    ] + [full_spec(w) for w in weights]

    # Lane-dense output: [B, S*D] with S*D a multiple of 128.
    out_spec = pl.BlockSpec((block_b, S * D), lambda i: (i, 0))

    out2 = pl.pallas_call(
        kernel,
        out_shape=jax.ShapeDtypeStruct((B, S * D), x.dtype),
        grid_spec=pltpu.PrefetchScalarGridSpec(
            num_scalar_prefetch=0,
            grid=grid,
            in_specs=in_specs,
            out_specs=out_spec,
        ),
        compiler_params=pltpu.CompilerParams(
            dimension_semantics=("parallel",),
            vmem_limit_bytes=32 * 1024 * 1024),
    )(x_rows, mask2, *weights)

    return out2.reshape(B, S, D)


# ---------------- pure-JAX reference (for correctness check) ----------------
def ref_encoder_layer(x, mask, p):
    def ln(xx, g, b):
        mean = xx.mean(-1, keepdims=True)
        var = ((xx - mean) ** 2).sum(-1, keepdims=True) / (xx.shape[-1] - 1)
        return g * (xx - mean) / (jnp.sqrt(var) + EPS) + b

    B, S, D = x.shape
    h, dk = N_HEADS, D // N_HEADS

    y = ln(x, p["a1"], p["b1"])
    q = y @ p["wq"].T + p["bq"]
    k = y @ p["wk"].T + p["bk"]
    v = y @ p["wv"].T + p["bv"]
    q = q.reshape(B, S, h, dk).transpose(0, 2, 1, 3)
    k = k.reshape(B, S, h, dk).transpose(0, 2, 1, 3)
    v = v.reshape(B, S, h, dk).transpose(0, 2, 1, 3)
    scores = jnp.einsum("bhqd,bhkd->bhqk", q, k) / math.sqrt(dk)
    m = mask[:, None, :, :]                       # [B,1,1,S]
    scores = jnp.where(m == 0, -1e9, scores)
    probs = jax.nn.softmax(scores, axis=-1)
    attn = jnp.einsum("bhqk,bhkd->bhqd", probs, v)
    attn = attn.transpose(0, 2, 1, 3).reshape(B, S, D)
    attn = attn @ p["wo"].T + p["bo"]
    x1 = x + attn

    y2 = ln(x1, p["a2"], p["b2"])
    ff = jnp.maximum(y2 @ p["w1"].T + p["b1f"], 0.0) @ p["w2"].T + p["b2f"]
    return x1 + ff


def init_params(key):
    ks = jax.random.split(key, 8)

    def lin(k, out_f, in_f):
        bound = 1.0 / math.sqrt(in_f)
        kw, kb = jax.random.split(k)
        w = jax.random.uniform(kw, (out_f, in_f), jnp.float32, -bound, bound)
        b = jax.random.uniform(kb, (1, out_f), jnp.float32, -bound, bound)
        return w, b

    wq, bq = lin(ks[0], D_MODEL, D_MODEL)
    wk, bk = lin(ks[1], D_MODEL, D_MODEL)
    wv, bv = lin(ks[2], D_MODEL, D_MODEL)
    wo, bo = lin(ks[3], D_MODEL, D_MODEL)
    w1, b1f = lin(ks[4], D_FF, D_MODEL)
    w2, b2f = lin(ks[5], D_MODEL, D_FF)
    return {
        "a1": jnp.ones((1, D_MODEL), jnp.float32),
        "b1": jnp.zeros((1, D_MODEL), jnp.float32),
        "a2": jnp.ones((1, D_MODEL), jnp.float32),
        "b2": jnp.zeros((1, D_MODEL), jnp.float32),
        "wq": wq, "bq": bq, "wk": wk, "bk": bk, "wv": wv, "bv": bv,
        "wo": wo, "bo": bo, "w1": w1, "b1f": b1f, "w2": w2, "b2f": b2f,
    }


if __name__ == "__main__":
    B, S = 2, 8
    key = jax.random.PRNGKey(0)
    kx, kp = jax.random.split(key)
    x = jax.random.normal(kx, (B, S, D_MODEL), jnp.float32)
    mask = jnp.ones((B, 1, S), jnp.float32)
    mask = mask.at[1, 0, -2:].set(0.0)   # mask out last two keys of batch 1
    params = init_params(kp)

    out = jax.block_until_ready(encoder_layer(x, mask, params))
    ref = ref_encoder_layer(x, mask, params)
    assert out.shape == (B, S, D_MODEL)
    err = float(jnp.max(jnp.abs(out - ref)))
    assert err < 2e-3, err
    print("KERNEL_OK")
</pallas_src>

<mosaic_0001>
module attributes {stable_mosaic.version = 11 : i64} {
  func.func @encoder_layer_kernel(%arg0: i32, %arg1: memref<16x32xf32, #tpu.memory_space<vmem>>, %arg2: memref<2x8xf32, #tpu.memory_space<vmem>>, %arg3: memref<1x32xf32, #tpu.memory_space<vmem>>, %arg4: memref<1x32xf32, #tpu.memory_space<vmem>>, %arg5: memref<96x32xf32, #tpu.memory_space<vmem>>, %arg6: memref<1x96xf32, #tpu.memory_space<vmem>>, %arg7: memref<32x32xf32, #tpu.memory_space<vmem>>, %arg8: memref<1x32xf32, #tpu.memory_space<vmem>>, %arg9: memref<1x32xf32, #tpu.memory_space<vmem>>, %arg10: memref<1x32xf32, #tpu.memory_space<vmem>>, %arg11: memref<64x32xf32, #tpu.memory_space<vmem>>, %arg12: memref<1x64xf32, #tpu.memory_space<vmem>>, %arg13: memref<32x64xf32, #tpu.memory_space<vmem>>, %arg14: memref<1x32xf32, #tpu.memory_space<vmem>>, %arg15: memref<2x256xf32, #tpu.memory_space<vmem>>) attributes {dimension_semantics = [#tpu.dimension_semantics<parallel>], iteration_bounds = array<i64: 1>, scalar_prefetch = 0 : i64, scratch_operands = 0 : i64, tpu.core_type = #tpu.core_type<tc>, window_params = [{transform_indices = @transform_0, window_bounds = array<i64: 16, 32>}, {transform_indices = @transform_1, window_bounds = array<i64: 2, 8>}, {pipeline_mode = #tpu.pipeline_mode<synchronous>, transform_indices = @transform_2, window_bounds = array<i64: 1, 32>}, {pipeline_mode = #tpu.pipeline_mode<synchronous>, transform_indices = @transform_3, window_bounds = array<i64: 1, 32>}, {pipeline_mode = #tpu.pipeline_mode<synchronous>, transform_indices = @transform_4, window_bounds = array<i64: 96, 32>}, {pipeline_mode = #tpu.pipeline_mode<synchronous>, transform_indices = @transform_5, window_bounds = array<i64: 1, 96>}, {pipeline_mode = #tpu.pipeline_mode<synchronous>, transform_indices = @transform_6, window_bounds = array<i64: 32, 32>}, {pipeline_mode = #tpu.pipeline_mode<synchronous>, transform_indices = @transform_7, window_bounds = array<i64: 1, 32>}, {pipeline_mode = #tpu.pipeline_mode<synchronous>, transform_indices = @transform_8, window_bounds = array<i64: 1, 32>}, {pipeline_mode = #tpu.pipeline_mode<synchronous>, transform_indices = @transform_9, window_bounds = array<i64: 1, 32>}, {pipeline_mode = #tpu.pipeline_mode<synchronous>, transform_indices = @transform_10, window_bounds = array<i64: 64, 32>}, {pipeline_mode = #tpu.pipeline_mode<synchronous>, transform_indices = @transform_11, window_bounds = array<i64: 1, 64>}, {pipeline_mode = #tpu.pipeline_mode<synchronous>, transform_indices = @transform_12, window_bounds = array<i64: 32, 64>}, {pipeline_mode = #tpu.pipeline_mode<synchronous>, transform_indices = @transform_13, window_bounds = array<i64: 1, 32>}, {transform_indices = @transform_14, window_bounds = array<i64: 2, 256>}]} {
    %c0 = arith.constant 0 : index
    %c0_0 = arith.constant 0 : index
    %0 = vector.load %arg1[%c0, %c0_0] : memref<16x32xf32, #tpu.memory_space<vmem>>, vector<16x32xf32>
    %c0_1 = arith.constant 0 : index
    %c0_2 = arith.constant 0 : index
    %1 = vector.load %arg2[%c0_1, %c0_2] : memref<2x8xf32, #tpu.memory_space<vmem>>, vector<2x8xf32>
    %cst = arith.constant 0.000000e+00 : f32
    %2 = vector.broadcast %cst : f32 to vector<2x8xf32>
    %3 = arith.cmpf one, %1, %2 : vector<2x8xf32>
    %4 = vector.shape_cast %3 : vector<2x8xi1> to vector<2x1x8xi1>
    %c0_3 = arith.constant 0 : index
    %c0_4 = arith.constant 0 : index
    %5 = vector.load %arg3[%c0_3, %c0_4] : memref<1x32xf32, #tpu.memory_space<vmem>>, vector<1x32xf32>
    %c0_5 = arith.constant 0 : index
    %c0_6 = arith.constant 0 : index
    %6 = vector.load %arg4[%c0_5, %c0_6] : memref<1x32xf32, #tpu.memory_space<vmem>>, vector<1x32xf32>
    %cst_7 = arith.constant dense<0.000000e+00> : vector<16xf32>
    %7 = vector.multi_reduction <add>, %0, %cst_7 [1] : vector<16x32xf32> to vector<16xf32>
    %8 = vector.shape_cast %7 : vector<16xf32> to vector<16x1xf32>
    %cst_8 = arith.constant 3.200000e+01 : f32
    %9 = vector.broadcast %cst_8 : f32 to vector<16x1xf32>
    %10 = arith.divf %8, %9 : vector<16x1xf32>
    %11 = vector.broadcast %10 : vector<16x1xf32> to vector<16x32xf32>
    %12 = arith.subf %0, %11 : vector<16x32xf32>
    %13 = arith.mulf %12, %12 : vector<16x32xf32>
    %cst_9 = arith.constant dense<0.000000e+00> : vector<16xf32>
    %14 = vector.multi_reduction <add>, %13, %cst_9 [1] : vector<16x32xf32> to vector<16xf32>
    %15 = vector.shape_cast %14 : vector<16xf32> to vector<16x1xf32>
    %cst_10 = arith.constant 3.100000e+01 : f32
    %16 = vector.broadcast %cst_10 : f32 to vector<16x1xf32>
    %17 = arith.divf %15, %16 : vector<16x1xf32>
    %18 = math.sqrt %17 : vector<16x1xf32>
    %cst_11 = arith.constant 9.99999997E-7 : f32
    %19 = vector.broadcast %cst_11 : f32 to vector<16x1xf32>
    %20 = arith.addf %18, %19 : vector<16x1xf32>
    %21 = tpu.reciprocal %20 : vector<16x1xf32> -> vector<16x1xf32>
    %22 = vector.broadcast %10 : vector<16x1xf32> to vector<16x32xf32>
    %23 = arith.subf %0, %22 : vector<16x32xf32>
    %24 = vector.broadcast %5 : vector<1x32xf32> to vector<16x32xf32>
    %25 = arith.mulf %24, %23 : vector<16x32xf32>
    %26 = vector.broadcast %21 : vector<16x1xf32> to vector<16x32xf32>
    %27 = arith.mulf %25, %26 : vector<16x32xf32>
    %28 = vector.broadcast %6 : vector<1x32xf32> to vector<16x32xf32>
    %29 = arith.addf %27, %28 : vector<16x32xf32>
    %c0_12 = arith.constant 0 : index
    %c0_13 = arith.constant 0 : index
    %30 = vector.load %arg5[%c0_12, %c0_13] : memref<96x32xf32, #tpu.memory_space<vmem>>, vector<96x32xf32>
    %cst_14 = arith.constant dense<0.000000e+00> : vector<16x96xf32>
    %31 = tpu.matmul %29, %30, %cst_14 {dimension_numbers = #tpu.dot_dimension_numbers<[1], [1], [0], [0], [0, 0, 1, 0], [], []>} : vector<16x32xf32>, vector<96x32xf32>, vector<16x96xf32> -> vector<16x96xf32>
    %c0_15 = arith.constant 0 : index
    %c0_16 = arith.constant 0 : index
    %32 = vector.load %arg6[%c0_15, %c0_16] : memref<1x96xf32, #tpu.memory_space<vmem>>, vector<1x96xf32>
    %33 = vector.broadcast %32 : vector<1x96xf32> to vector<16x96xf32>
    %34 = arith.addf %31, %33 : vector<16x96xf32>
    %35 = vector.shape_cast %34 : vector<16x96xf32> to vector<2x8x96xf32>
    %36 = vector.extract_strided_slice %35 {offsets = [0, 0, 0], sizes = [2, 8, 8], strides = [1, 1, 1]} : vector<2x8x96xf32> to vector<2x8x8xf32>
    %37 = vector.extract_strided_slice %35 {offsets = [0, 0, 32], sizes = [2, 8, 8], strides = [1, 1, 1]} : vector<2x8x96xf32> to vector<2x8x8xf32>
    %38 = vector.extract_strided_slice %35 {offsets = [0, 0, 64], sizes = [2, 8, 8], strides = [1, 1, 1]} : vector<2x8x96xf32> to vector<2x8x8xf32>
    "tpu.trace_start"() <{level = 10 : i32, message = "bqd,bkd->bqk"}> : () -> ()
    %cst_17 = arith.constant dense<0.000000e+00> : vector<2x8x8xf32>
    %39 = tpu.matmul %36, %37, %cst_17 {dimension_numbers = #tpu.dot_dimension_numbers<[2], [2], [1], [1], [0, 0, 0, 1, 1, 1], [0], [0]>} : vector<2x8x8xf32>, vector<2x8x8xf32>, vector<2x8x8xf32> -> vector<2x8x8xf32>
    "tpu.trace_stop"() : () -> ()
    %cst_18 = arith.constant 0.353553385 : f32
    %40 = vector.broadcast %cst_18 : f32 to vector<2x8x8xf32>
    %41 = arith.mulf %39, %40 : vector<2x8x8xf32>
    %cst_19 = arith.constant -1.000000e+09 : f32
    %42 = vector.shape_cast %4 : vector<2x1x8xi1> to vector<2x1x8xi1>
    %43 = vector.broadcast %42 : vector<2x1x8xi1> to vector<2x8x8xi1>
    %44 = vector.broadcast %cst_19 : f32 to vector<2x8x8xf32>
    %45 = arith.select %43, %41, %44 : vector<2x8x8xi1>, vector<2x8x8xf32>
    %cst_20 = arith.constant dense<0xFF800000> : vector<2x8xf32>
    %46 = vector.multi_reduction <maximumf>, %45, %cst_20 [2] : vector<2x8x8xf32> to vector<2x8xf32>
    %47 = vector.shape_cast %46 : vector<2x8xf32> to vector<2x8x1xf32>
    %48 = vector.broadcast %47 : vector<2x8x1xf32> to vector<2x8x8xf32>
    %49 = arith.subf %45, %48 : vector<2x8x8xf32>
    %50 = math.exp %49 : vector<2x8x8xf32>
    %cst_21 = arith.constant dense<0.000000e+00> : vector<2x8xf32>
    %51 = vector.multi_reduction <add>, %50, %cst_21 [2] : vector<2x8x8xf32> to vector<2x8xf32>
    %52 = vector.shape_cast %51 : vector<2x8xf32> to vector<2x8x1xf32>
    %53 = tpu.reciprocal %52 : vector<2x8x1xf32> -> vector<2x8x1xf32>
    %54 = vector.broadcast %53 : vector<2x8x1xf32> to vector<2x8x8xf32>
    %55 = arith.mulf %50, %54 : vector<2x8x8xf32>
    "tpu.trace_start"() <{level = 10 : i32, message = "bqk,bkd->bqd"}> : () -> ()
    %cst_22 = arith.constant dense<0.000000e+00> : vector<2x8x8xf32>
    %56 = tpu.matmul %55, %38, %cst_22 {dimension_numbers = #tpu.dot_dimension_numbers<[2], [1], [1], [2], [0, 0, 0, 1, 1, 2], [0], [0]>} : vector<2x8x8xf32>, vector<2x8x8xf32>, vector<2x8x8xf32> -> vector<2x8x8xf32>
    "tpu.trace_stop"() : () -> ()
    %57 = vector.extract_strided_slice %35 {offsets = [0, 0, 8], sizes = [2, 8, 8], strides = [1, 1, 1]} : vector<2x8x96xf32> to vector<2x8x8xf32>
    %58 = vector.extract_strided_slice %35 {offsets = [0, 0, 40], sizes = [2, 8, 8], strides = [1, 1, 1]} : vector<2x8x96xf32> to vector<2x8x8xf32>
    %59 = vector.extract_strided_slice %35 {offsets = [0, 0, 72], sizes = [2, 8, 8], strides = [1, 1, 1]} : vector<2x8x96xf32> to vector<2x8x8xf32>
    "tpu.trace_start"() <{level = 10 : i32, message = "bqd,bkd->bqk"}> : () -> ()
    %cst_23 = arith.constant dense<0.000000e+00> : vector<2x8x8xf32>
    %60 = tpu.matmul %57, %58, %cst_23 {dimension_numbers = #tpu.dot_dimension_numbers<[2], [2], [1], [1], [0, 0, 0, 1, 1, 1], [0], [0]>} : vector<2x8x8xf32>, vector<2x8x8xf32>, vector<2x8x8xf32> -> vector<2x8x8xf32>
    "tpu.trace_stop"() : () -> ()
    %cst_24 = arith.constant 0.353553385 : f32
    %61 = vector.broadcast %cst_24 : f32 to vector<2x8x8xf32>
    %62 = arith.mulf %60, %61 : vector<2x8x8xf32>
    %cst_25 = arith.constant -1.000000e+09 : f32
    %63 = vector.shape_cast %4 : vector<2x1x8xi1> to vector<2x1x8xi1>
    %64 = vector.broadcast %63 : vector<2x1x8xi1> to vector<2x8x8xi1>
    %65 = vector.broadcast %cst_25 : f32 to vector<2x8x8xf32>
    %66 = arith.select %64, %62, %65 : vector<2x8x8xi1>, vector<2x8x8xf32>
    %cst_26 = arith.constant dense<0xFF800000> : vector<2x8xf32>
    %67 = vector.multi_reduction <maximumf>, %66, %cst_26 [2] : vector<2x8x8xf32> to vector<2x8xf32>
    %68 = vector.shape_cast %67 : vector<2x8xf32> to vector<2x8x1xf32>
    %69 = vector.broadcast %68 : vector<2x8x1xf32> to vector<2x8x8xf32>
    %70 = arith.subf %66, %69 : vector<2x8x8xf32>
    %71 = math.exp %70 : vector<2x8x8xf32>
    %cst_27 = arith.constant dense<0.000000e+00> : vector<2x8xf32>
    %72 = vector.multi_reduction <add>, %71, %cst_27 [2] : vector<2x8x8xf32> to vector<2x8xf32>
    %73 = vector.shape_cast %72 : vector<2x8xf32> to vector<2x8x1xf32>
    %74 = tpu.reciprocal %73 : vector<2x8x1xf32> -> vector<2x8x1xf32>
    %75 = vector.broadcast %74 : vector<2x8x1xf32> to vector<2x8x8xf32>
    %76 = arith.mulf %71, %75 : vector<2x8x8xf32>
    "tpu.trace_start"() <{level = 10 : i32, message = "bqk,bkd->bqd"}> : () -> ()
    %cst_28 = arith.constant dense<0.000000e+00> : vector<2x8x8xf32>
    %77 = tpu.matmul %76, %59, %cst_28 {dimension_numbers = #tpu.dot_dimension_numbers<[2], [1], [1], [2], [0, 0, 0, 1, 1, 2], [0], [0]>} : vector<2x8x8xf32>, vector<2x8x8xf32>, vector<2x8x8xf32> -> vector<2x8x8xf32>
    "tpu.trace_stop"() : () -> ()
    %78 = vector.extract_strided_slice %35 {offsets = [0, 0, 16], sizes = [2, 8, 8], strides = [1, 1, 1]} : vector<2x8x96xf32> to vector<2x8x8xf32>
    %79 = vector.extract_strided_slice %35 {offsets = [0, 0, 48], sizes = [2, 8, 8], strides = [1, 1, 1]} : vector<2x8x96xf32> to vector<2x8x8xf32>
    %80 = vector.extract_strided_slice %35 {offsets = [0, 0, 80], sizes = [2, 8, 8], strides = [1, 1, 1]} : vector<2x8x96xf32> to vector<2x8x8xf32>
    "tpu.trace_start"() <{level = 10 : i32, message = "bqd,bkd->bqk"}> : () -> ()
    %cst_29 = arith.constant dense<0.000000e+00> : vector<2x8x8xf32>
    %81 = tpu.matmul %78, %79, %cst_29 {dimension_numbers = #tpu.dot_dimension_numbers<[2], [2], [1], [1], [0, 0, 0, 1, 1, 1], [0], [0]>} : vector<2x8x8xf32>, vector<2x8x8xf32>, vector<2x8x8xf32> -> vector<2x8x8xf32>
    "tpu.trace_stop"() : () -> ()
    %cst_30 = arith.constant 0.353553385 : f32
    %82 = vector.broadcast %cst_30 : f32 to vector<2x8x8xf32>
    %83 = arith.mulf %81, %82 : vector<2x8x8xf32>
    %cst_31 = arith.constant -1.000000e+09 : f32
    %84 = vector.shape_cast %4 : vector<2x1x8xi1> to vector<2x1x8xi1>
    %85 = vector.broadcast %84 : vector<2x1x8xi1> to vector<2x8x8xi1>
    %86 = vector.broadcast %cst_31 : f32 to vector<2x8x8xf32>
    %87 = arith.select %85, %83, %86 : vector<2x8x8xi1>, vector<2x8x8xf32>
    %cst_32 = arith.constant dense<0xFF800000> : vector<2x8xf32>
    %88 = vector.multi_reduction <maximumf>, %87, %cst_32 [2] : vector<2x8x8xf32> to vector<2x8xf32>
    %89 = vector.shape_cast %88 : vector<2x8xf32> to vector<2x8x1xf32>
    %90 = vector.broadcast %89 : vector<2x8x1xf32> to vector<2x8x8xf32>
    %91 = arith.subf %87, %90 : vector<2x8x8xf32>
    %92 = math.exp %91 : vector<2x8x8xf32>
    %cst_33 = arith.constant dense<0.000000e+00> : vector<2x8xf32>
    %93 = vector.multi_reduction <add>, %92, %cst_33 [2] : vector<2x8x8xf32> to vector<2x8xf32>
    %94 = vector.shape_cast %93 : vector<2x8xf32> to vector<2x8x1xf32>
    %95 = tpu.reciprocal %94 : vector<2x8x1xf32> -> vector<2x8x1xf32>
    %96 = vector.broadcast %95 : vector<2x8x1xf32> to vector<2x8x8xf32>
    %97 = arith.mulf %92, %96 : vector<2x8x8xf32>
    "tpu.trace_start"() <{level = 10 : i32, message = "bqk,bkd->bqd"}> : () -> ()
    %cst_34 = arith.constant dense<0.000000e+00> : vector<2x8x8xf32>
    %98 = tpu.matmul %97, %80, %cst_34 {dimension_numbers = #tpu.dot_dimension_numbers<[2], [1], [1], [2], [0, 0, 0, 1, 1, 2], [0], [0]>} : vector<2x8x8xf32>, vector<2x8x8xf32>, vector<2x8x8xf32> -> vector<2x8x8xf32>
    "tpu.trace_stop"() : () -> ()
    %99 = vector.extract_strided_slice %35 {offsets = [0, 0, 24], sizes = [2, 8, 8], strides = [1, 1, 1]} : vector<2x8x96xf32> to vector<2x8x8xf32>
    %100 = vector.extract_strided_slice %35 {offsets = [0, 0, 56], sizes = [2, 8, 8], strides = [1, 1, 1]} : vector<2x8x96xf32> to vector<2x8x8xf32>
    %101 = vector.extract_strided_slice %35 {offsets = [0, 0, 88], sizes = [2, 8, 8], strides = [1, 1, 1]} : vector<2x8x96xf32> to vector<2x8x8xf32>
    "tpu.trace_start"() <{level = 10 : i32, message = "bqd,bkd->bqk"}> : () -> ()
    %cst_35 = arith.constant dense<0.000000e+00> : vector<2x8x8xf32>
    %102 = tpu.matmul %99, %100, %cst_35 {dimension_numbers = #tpu.dot_dimension_numbers<[2], [2], [1], [1], [0, 0, 0, 1, 1, 1], [0], [0]>} : vector<2x8x8xf32>, vector<2x8x8xf32>, vector<2x8x8xf32> -> vector<2x8x8xf32>
    "tpu.trace_stop"() : () -> ()
    %cst_36 = arith.constant 0.353553385 : f32
    %103 = vector.broadcast %cst_36 : f32 to vector<2x8x8xf32>
    %104 = arith.mulf %102, %103 : vector<2x8x8xf32>
    %cst_37 = arith.constant -1.000000e+09 : f32
    %105 = vector.shape_cast %4 : vector<2x1x8xi1> to vector<2x1x8xi1>
    %106 = vector.broadcast %105 : vector<2x1x8xi1> to vector<2x8x8xi1>
    %107 = vector.broadcast %cst_37 : f32 to vector<2x8x8xf32>
    %108 = arith.select %106, %104, %107 : vector<2x8x8xi1>, vector<2x8x8xf32>
    %cst_38 = arith.constant dense<0xFF800000> : vector<2x8xf32>
    %109 = vector.multi_reduction <maximumf>, %108, %cst_38 [2] : vector<2x8x8xf32> to vector<2x8xf32>
    %110 = vector.shape_cast %109 : vector<2x8xf32> to vector<2x8x1xf32>
    %111 = vector.broadcast %110 : vector<2x8x1xf32> to vector<2x8x8xf32>
    %112 = arith.subf %108, %111 : vector<2x8x8xf32>
    %113 = math.exp %112 : vector<2x8x8xf32>
    %cst_39 = arith.constant dense<0.000000e+00> : vector<2x8xf32>
    %114 = vector.multi_reduction <add>, %113, %cst_39 [2] : vector<2x8x8xf32> to vector<2x8xf32>
    %115 = vector.shape_cast %114 : vector<2x8xf32> to vector<2x8x1xf32>
    %116 = tpu.reciprocal %115 : vector<2x8x1xf32> -> vector<2x8x1xf32>
    %117 = vector.broadcast %116 : vector<2x8x1xf32> to vector<2x8x8xf32>
    %118 = arith.mulf %113, %117 : vector<2x8x8xf32>
    "tpu.trace_start"() <{level = 10 : i32, message = "bqk,bkd->bqd"}> : () -> ()
    %cst_40 = arith.constant dense<0.000000e+00> : vector<2x8x8xf32>
    %119 = tpu.matmul %118, %101, %cst_40 {dimension_numbers = #tpu.dot_dimension_numbers<[2], [1], [1], [2], [0, 0, 0, 1, 1, 2], [0], [0]>} : vector<2x8x8xf32>, vector<2x8x8xf32>, vector<2x8x8xf32> -> vector<2x8x8xf32>
    "tpu.trace_stop"() : () -> ()
    %120 = tpu.concatenate %56, %77, %98, %119 in 2 : vector<2x8x8xf32>, vector<2x8x8xf32>, vector<2x8x8xf32>, vector<2x8x8xf32> -> vector<2x8x32xf32>
    %121 = vector.shape_cast %120 : vector<2x8x32xf32> to vector<16x32xf32>
    %c0_41 = arith.constant 0 : index
    %c0_42 = arith.constant 0 : index
    %122 = vector.load %arg7[%c0_41, %c0_42] : memref<32x32xf32, #tpu.memory_space<vmem>>, vector<32x32xf32>
    %cst_43 = arith.constant dense<0.000000e+00> : vector<16x32xf32>
    %123 = tpu.matmul %121, %122, %cst_43 {dimension_numbers = #tpu.dot_dimension_numbers<[1], [1], [0], [0], [0, 0, 1, 0], [], []>} : vector<16x32xf32>, vector<32x32xf32>, vector<16x32xf32> -> vector<16x32xf32>
    %c0_44 = arith.constant 0 : index
    %c0_45 = arith.constant 0 : index
    %124 = vector.load %arg8[%c0_44, %c0_45] : memref<1x32xf32, #tpu.memory_space<vmem>>, vector<1x32xf32>
    %125 = vector.broadcast %124 : vector<1x32xf32> to vector<16x32xf32>
    %126 = arith.addf %123, %125 : vector<16x32xf32>
    %127 = arith.addf %0, %126 : vector<16x32xf32>
    %c0_46 = arith.constant 0 : index
    %c0_47 = arith.constant 0 : index
    %128 = vector.load %arg9[%c0_46, %c0_47] : memref<1x32xf32, #tpu.memory_space<vmem>>, vector<1x32xf32>
    %c0_48 = arith.constant 0 : index
    %c0_49 = arith.constant 0 : index
    %129 = vector.load %arg10[%c0_48, %c0_49] : memref<1x32xf32, #tpu.memory_space<vmem>>, vector<1x32xf32>
    %cst_50 = arith.constant dense<0.000000e+00> : vector<16xf32>
    %130 = vector.multi_reduction <add>, %127, %cst_50 [1] : vector<16x32xf32> to vector<16xf32>
    %131 = vector.shape_cast %130 : vector<16xf32> to vector<16x1xf32>
    %cst_51 = arith.constant 3.200000e+01 : f32
    %132 = vector.broadcast %cst_51 : f32 to vector<16x1xf32>
    %133 = arith.divf %131, %132 : vector<16x1xf32>
    %134 = vector.broadcast %133 : vector<16x1xf32> to vector<16x32xf32>
    %135 = arith.subf %127, %134 : vector<16x32xf32>
    %136 = arith.mulf %135, %135 : vector<16x32xf32>
    %cst_52 = arith.constant dense<0.000000e+00> : vector<16xf32>
    %137 = vector.multi_reduction <add>, %136, %cst_52 [1] : vector<16x32xf32> to vector<16xf32>
    %138 = vector.shape_cast %137 : vector<16xf32> to vector<16x1xf32>
    %cst_53 = arith.constant 3.100000e+01 : f32
    %139 = vector.broadcast %cst_53 : f32 to vector<16x1xf32>
    %140 = arith.divf %138, %139 : vector<16x1xf32>
    %141 = math.sqrt %140 : vector<16x1xf32>
    %cst_54 = arith.constant 9.99999997E-7 : f32
    %142 = vector.broadcast %cst_54 : f32 to vector<16x1xf32>
    %143 = arith.addf %141, %142 : vector<16x1xf32>
    %144 = tpu.reciprocal %143 : vector<16x1xf32> -> vector<16x1xf32>
    %145 = vector.broadcast %133 : vector<16x1xf32> to vector<16x32xf32>
    %146 = arith.subf %127, %145 : vector<16x32xf32>
    %147 = vector.broadcast %128 : vector<1x32xf32> to vector<16x32xf32>
    %148 = arith.mulf %147, %146 : vector<16x32xf32>
    %149 = vector.broadcast %144 : vector<16x1xf32> to vector<16x32xf32>
    %150 = arith.mulf %148, %149 : vector<16x32xf32>
    %151 = vector.broadcast %129 : vector<1x32xf32> to vector<16x32xf32>
    %152 = arith.addf %150, %151 : vector<16x32xf32>
    %c0_55 = arith.constant 0 : index
    %c0_56 = arith.constant 0 : index
    %153 = vector.load %arg11[%c0_55, %c0_56] : memref<64x32xf32, #tpu.memory_space<vmem>>, vector<64x32xf32>
    %cst_57 = arith.constant dense<0.000000e+00> : vector<16x64xf32>
    %154 = tpu.matmul %152, %153, %cst_57 {dimension_numbers = #tpu.dot_dimension_numbers<[1], [1], [0], [0], [0, 0, 1, 0], [], []>} : vector<16x32xf32>, vector<64x32xf32>, vector<16x64xf32> -> vector<16x64xf32>
    %c0_58 = arith.constant 0 : index
    %c0_59 = arith.constant 0 : index
    %155 = vector.load %arg12[%c0_58, %c0_59] : memref<1x64xf32, #tpu.memory_space<vmem>>, vector<1x64xf32>
    %156 = vector.broadcast %155 : vector<1x64xf32> to vector<16x64xf32>
    %157 = arith.addf %154, %156 : vector<16x64xf32>
    %cst_60 = arith.constant 0.000000e+00 : f32
    %158 = vector.broadcast %cst_60 : f32 to vector<16x64xf32>
    %159 = arith.maximumf %157, %158 : vector<16x64xf32>
    %c0_61 = arith.constant 0 : index
    %c0_62 = arith.constant 0 : index
    %160 = vector.load %arg13[%c0_61, %c0_62] : memref<32x64xf32, #tpu.memory_space<vmem>>, vector<32x64xf32>
    %cst_63 = arith.constant dense<0.000000e+00> : vector<16x32xf32>
    %161 = tpu.matmul %159, %160, %cst_63 {dimension_numbers = #tpu.dot_dimension_numbers<[1], [1], [0], [0], [0, 0, 1, 0], [], []>} : vector<16x64xf32>, vector<32x64xf32>, vector<16x32xf32> -> vector<16x32xf32>
    %c0_64 = arith.constant 0 : index
    %c0_65 = arith.constant 0 : index
    %162 = vector.load %arg14[%c0_64, %c0_65] : memref<1x32xf32, #tpu.memory_space<vmem>>, vector<1x32xf32>
    %163 = vector.broadcast %162 : vector<1x32xf32> to vector<16x32xf32>
    %164 = arith.addf %161, %163 : vector<16x32xf32>
    %165 = arith.addf %127, %164 : vector<16x32xf32>
    %166 = vector.shape_cast %165 : vector<16x32xf32> to vector<2x8x32xf32>
    %167 = vector.extract_strided_slice %166 {offsets = [0, 0, 0], sizes = [2, 1, 32], strides = [1, 1, 1]} : vector<2x8x32xf32> to vector<2x1x32xf32>
    %168 = vector.shape_cast %167 : vector<2x1x32xf32> to vector<2x32xf32>
    %c0_66 = arith.constant 0 : index
    %c0_67 = arith.constant 0 : index
    %169 = vector.load %arg15[%c0_66, %c0_67] : memref<2x256xf32, #tpu.memory_space<vmem>>, vector<2x32xf32>
    tpu.vector_store %arg15[%c0_66, %c0_67], %168 {strides = array<i32>} : memref<2x256xf32, #tpu.memory_space<vmem>>, vector<2x32xf32>,
    %170 = vector.extract_strided_slice %166 {offsets = [0, 1, 0], sizes = [2, 1, 32], strides = [1, 1, 1]} : vector<2x8x32xf32> to vector<2x1x32xf32>
    %171 = vector.shape_cast %170 : vector<2x1x32xf32> to vector<2x32xf32>
    %c0_68 = arith.constant 0 : index
    %c32 = arith.constant 32 : index
    %172 = vector.load %arg15[%c0_68, %c32] : memref<2x256xf32, #tpu.memory_space<vmem>>, vector<2x32xf32>
    tpu.vector_store %arg15[%c0_68, %c32], %171 {strides = array<i32>} : memref<2x256xf32, #tpu.memory_space<vmem>>, vector<2x32xf32>,
    %173 = vector.extract_strided_slice %166 {offsets = [0, 2, 0], sizes = [2, 1, 32], strides = [1, 1, 1]} : vector<2x8x32xf32> to vector<2x1x32xf32>
    %174 = vector.shape_cast %173 : vector<2x1x32xf32> to vector<2x32xf32>
    %c0_69 = arith.constant 0 : index
    %c64 = arith.constant 64 : index
    %175 = vector.load %arg15[%c0_69, %c64] : memref<2x256xf32, #tpu.memory_space<vmem>>, vector<2x32xf32>
    tpu.vector_store %arg15[%c0_69, %c64], %174 {strides = array<i32>} : memref<2x256xf32, #tpu.memory_space<vmem>>, vector<2x32xf32>,
    %176 = vector.extract_strided_slice %166 {offsets = [0, 3, 0], sizes = [2, 1, 32], strides = [1, 1, 1]} : vector<2x8x32xf32> to vector<2x1x32xf32>
    %177 = vector.shape_cast %176 : vector<2x1x32xf32> to vector<2x32xf32>
    %c0_70 = arith.constant 0 : index
    %c96 = arith.constant 96 : index
    %178 = vector.load %arg15[%c0_70, %c96] : memref<2x256xf32, #tpu.memory_space<vmem>>, vector<2x32xf32>
    tpu.vector_store %arg15[%c0_70, %c96], %177 {strides = array<i32>} : memref<2x256xf32, #tpu.memory_space<vmem>>, vector<2x32xf32>,
    %179 = vector.extract_strided_slice %166 {offsets = [0, 4, 0], sizes = [2, 1, 32], strides = [1, 1, 1]} : vector<2x8x32xf32> to vector<2x1x32xf32>
    %180 = vector.shape_cast %179 : vector<2x1x32xf32> to vector<2x32xf32>
    %c0_71 = arith.constant 0 : index
    %c128 = arith.constant 128 : index
    %181 = vector.load %arg15[%c0_71, %c128] : memref<2x256xf32, #tpu.memory_space<vmem>>, vector<2x32xf32>
    tpu.vector_store %arg15[%c0_71, %c128], %180 {strides = array<i32>} : memref<2x256xf32, #tpu.memory_space<vmem>>, vector<2x32xf32>,
    %182 = vector.extract_strided_slice %166 {offsets = [0, 5, 0], sizes = [2, 1, 32], strides = [1, 1, 1]} : vector<2x8x32xf32> to vector<2x1x32xf32>
    %183 = vector.shape_cast %182 : vector<2x1x32xf32> to vector<2x32xf32>
    %c0_72 = arith.constant 0 : index
    %c160 = arith.constant 160 : index
    %184 = vector.load %arg15[%c0_72, %c160] : memref<2x256xf32, #tpu.memory_space<vmem>>, vector<2x32xf32>
    tpu.vector_store %arg15[%c0_72, %c160], %183 {strides = array<i32>} : memref<2x256xf32, #tpu.memory_space<vmem>>, vector<2x32xf32>,
    %185 = vector.extract_strided_slice %166 {offsets = [0, 6, 0], sizes = [2, 1, 32], strides = [1, 1, 1]} : vector<2x8x32xf32> to vector<2x1x32xf32>
    %186 = vector.shape_cast %185 : vector<2x1x32xf32> to vector<2x32xf32>
    %c0_73 = arith.constant 0 : index
    %c192 = arith.constant 192 : index
    %187 = vector.load %arg15[%c0_73, %c192] : memref<2x256xf32, #tpu.memory_space<vmem>>, vector<2x32xf32>
    tpu.vector_store %arg15[%c0_73, %c192], %186 {strides = array<i32>} : memref<2x256xf32, #tpu.memory_space<vmem>>, vector<2x32xf32>,
    %188 = vector.extract_strided_slice %166 {offsets = [0, 7, 0], sizes = [2, 1, 32], strides = [1, 1, 1]} : vector<2x8x32xf32> to vector<2x1x32xf32>
    %189 = vector.shape_cast %188 : vector<2x1x32xf32> to vector<2x32xf32>
    %c0_74 = arith.constant 0 : index
    %c224 = arith.constant 224 : index
    %190 = vector.load %arg15[%c0_74, %c224] : memref<2x256xf32, #tpu.memory_space<vmem>>, vector<2x32xf32>
    tpu.vector_store %arg15[%c0_74, %c224], %189 {strides = array<i32>} : memref<2x256xf32, #tpu.memory_space<vmem>>, vector<2x32xf32>,
    return
  }
  func.func @transform_0(%arg0: i32) -> (i32, i32) {
    %c0_i32 = arith.constant 0 : i32
    %c0_i32_0 = arith.constant 0 : i32
    return %arg0, %c0_i32 : i32, i32
  }
  func.func @transform_1(%arg0: i32) -> (i32, i32) {
    %c0_i32 = arith.constant 0 : i32
    %c0_i32_0 = arith.constant 0 : i32
    return %arg0, %c0_i32 : i32, i32
  }
  func.func @transform_2(%arg0: i32) -> (i32, i32) {
    %c0_i32 = arith.constant 0 : i32
    %c0_i32_0 = arith.constant 0 : i32
    %c0_i32_1 = arith.constant 0 : i32
    return %c0_i32, %c0_i32_0 : i32, i32
  }
  func.func @transform_3(%arg0: i32) -> (i32, i32) {
    %c0_i32 = arith.constant 0 : i32
    %c0_i32_0 = arith.constant 0 : i32
    %c0_i32_1 = arith.constant 0 : i32
    return %c0_i32, %c0_i32_0 : i32, i32
  }
  func.func @transform_4(%arg0: i32) -> (i32, i32) {
    %c0_i32 = arith.constant 0 : i32
    %c0_i32_0 = arith.constant 0 : i32
    %c0_i32_1 = arith.constant 0 : i32
    return %c0_i32, %c0_i32_0 : i32, i32
  }
  func.func @transform_5(%arg0: i32) -> (i32, i32) {
    %c0_i32 = arith.constant 0 : i32
    %c0_i32_0 = arith.constant 0 : i32
    %c0_i32_1 = arith.constant 0 : i32
    return %c0_i32, %c0_i32_0 : i32, i32
  }
  func.func @transform_6(%arg0: i32) -> (i32, i32) {
    %c0_i32 = arith.constant 0 : i32
    %c0_i32_0 = arith.constant 0 : i32
    %c0_i32_1 = arith.constant 0 : i32
    return %c0_i32, %c0_i32_0 : i32, i32
  }
  func.func @transform_7(%arg0: i32) -> (i32, i32) {
    %c0_i32 = arith.constant 0 : i32
    %c0_i32_0 = arith.constant 0 : i32
    %c0_i32_1 = arith.constant 0 : i32
    return %c0_i32, %c0_i32_0 : i32, i32
  }
  func.func @transform_8(%arg0: i32) -> (i32, i32) {
    %c0_i32 = arith.constant 0 : i32
    %c0_i32_0 = arith.constant 0 : i32
    %c0_i32_1 = arith.constant 0 : i32
    return %c0_i32, %c0_i32_0 : i32, i32
  }
  func.func @transform_9(%arg0: i32) -> (i32, i32) {
    %c0_i32 = arith.constant 0 : i32
    %c0_i32_0 = arith.constant 0 : i32
    %c0_i32_1 = arith.constant 0 : i32
    return %c0_i32, %c0_i32_0 : i32, i32
  }
  func.func @transform_10(%arg0: i32) -> (i32, i32) {
    %c0_i32 = arith.constant 0 : i32
    %c0_i32_0 = arith.constant 0 : i32
    %c0_i32_1 = arith.constant 0 : i32
    return %c0_i32, %c0_i32_0 : i32, i32
  }
  func.func @transform_11(%arg0: i32) -> (i32, i32) {
    %c0_i32 = arith.constant 0 : i32
    %c0_i32_0 = arith.constant 0 : i32
    %c0_i32_1 = arith.constant 0 : i32
    return %c0_i32, %c0_i32_0 : i32, i32
  }
  func.func @transform_12(%arg0: i32) -> (i32, i32) {
    %c0_i32 = arith.constant 0 : i32
    %c0_i32_0 = arith.constant 0 : i32
    %c0_i32_1 = arith.constant 0 : i32
    return %c0_i32, %c0_i32_0 : i32, i32
  }
  func.func @transform_13(%arg0: i32) -> (i32, i32) {
    %c0_i32 = arith.constant 0 : i32
    %c0_i32_0 = arith.constant 0 : i32
    %c0_i32_1 = arith.constant 0 : i32
    return %c0_i32, %c0_i32_0 : i32, i32
  }
  func.func @transform_14(%arg0: i32) -> (i32, i32) {
    %c0_i32 = arith.constant 0 : i32
    %c0_i32_0 = arith.constant 0 : i32
    return %arg0, %c0_i32 : i32, i32
  }
}

</mosaic_0001>

<bundles_post_ra>
// kernel: tpu_custom_call.1
= control target key start
LH: loop header
LB: loop body
LE: loop exit
PB: predicated region body
PF: predicated region fallthrough
CT: control target
= control target key end

     0   :  { %vm79_vm0 = vcmask 261120   ;;  %s3175_s0 = inlined_call_operand.vmem [shape: f32[16,32], index: 0, kind: input, shape index: {}]   ;;  %s3176_s1 = inlined_call_operand.vmem [shape: f32[2,8], index: 1, kind: input, shape index: {}]   ;;  %s3177_s2 = inlined_call_operand.vmem [shape: f32[1,32], index: 2, kind: input, shape index: {}]   ;;  %s3178_s3 = inlined_call_operand.vmem [shape: f32[1,32], index: 3, kind: input, shape index: {}]   ;;  %s3179_s4 = inlined_call_operand.vmem [shape: f32[96,32], index: 4, kind: input, shape index: {}]   ;;  %s3180_s5 = inlined_call_operand.vmem [shape: f32[1,96], index: 5, kind: input, shape index: {}]   ;;  %s3181_s6 = inlined_call_operand.vmem [shape: f32[32,32], index: 6, kind: input, shape index: {}]   ;;  %s3182_s7 = inlined_call_operand.vmem [shape: f32[1,32], index: 7, kind: input, shape index: {}]   ;;  %s3183_s8 = inlined_call_operand.vmem [shape: f32[1,32], index: 8, kind: input, shape index: {}]   ;;  %s3184_s9 = inlined_call_operand.vmem [shape: f32[1,32], index: 9, kind: input, shape index: {}]   ;;  %s3185_s10 = inlined_call_operand.vmem [shape: f32[64,32], index: 10, kind: input, shape index: {}]   ;;  %s3186_s11 = inlined_call_operand.vmem [shape: f32[1,64], index: 11, kind: input, shape index: {}]   ;;  %s3187_s12 = inlined_call_operand.vmem [shape: f32[32,64], index: 12, kind: input, shape index: {}]   ;;  %s3188_s13 = inlined_call_operand.vmem [shape: f32[1,32], index: 13, kind: input, shape index: {}]   ;;  %s3189_s14 = inlined_call_operand.hbm [shape: f32[2,256], index: 14, kind: output, shape index: {}]  }
   0x1   :  { %v2750_v0 = vld [vmem:[%s3175_s0] sm:$0xff]  ;;  %v2755_v1 = vld [vmem:[%s3175_s0 + $0x8] sm:$0xff] }
   0x2   :  { %v80_v2 = vsel %vm79_vm0, %v2750_v0, 0.0 }
   0x3   :  { %81 = vadd.xlane.f32.xlu0 %v80_v2 }
   0x4   :  { %19 = vsyncpa [#allocation3], 0  ;;  %v83_v3 = vsel %vm79_vm0, %v2755_v1, 0.0  ;;  %v138_v5 = vld [vmem:[%s3179_s4] sm:$0xff]  ;;  %v139_v6 = vld [vmem:[%s3179_s4 + $0x8] sm:$0xff]  ;;  %v2651_v59 = vmov 0.0  }
   0x5   :  { %vm2763_vm1 = vmpackc.low %vm79_vm0, %vm79_vm0  ;;  %v140_v7 = vld [vmem:[%s3179_s4 + $0x10] sm:$0xff]  ;;  %v2474_v8 = vpack.c.bf16 %v139_v6, %v138_v5  ;;  %v141_v9 = vld [vmem:[%s3179_s4 + $0x18] sm:$0xff]  ;;  %2353 = vmatprep.subr.mxu1 %v2651_v59  ;;  %vm2652_vm6 = vmmov 0   ;;  %s2653_s26 = smov 96   ;;  %vm277_vm7 = vcmask 64512   ;;  %s2657_s28 = smov 88  }
   0x6   :  { %v2480_v10 = vpack.c.bf16 %v141_v9, %v140_v7  ;;  %v142_v21 = vld [vmem:[%s3179_s4 + $0x20] sm:$0xff]  ;;  %v143_v22 = vld [vmem:[%s3179_s4 + $0x28] sm:$0xff]  ;;  %v144_v24 = vld [vmem:[%s3179_s4 + $0x30] sm:$0xff]  ;;  %2355 = vmatprep.mubr.msk.f32.mxu1 %vm2652_vm6, %v2651_v59  ;;  %v2654_v6 = vmov 1966171168   ;;  %s2658_s29 = smov 120  }
   0x7   :  { %84 = vadd.xlane.f32.xlu0 %v83_v3  ;;  %2476 = vmatprep.subr.msk.bf16.mxu0 %vm2763_vm1, %v2474_v8  ;;  %v2486_v23 = vpack.c.bf16 %v143_v22, %v142_v21  ;;  %v145_v25 = vld [vmem:[%s3179_s4 + $0x38] sm:$0xff]  ;;  %v146_v27 = vld [vmem:[%s3179_s4 + $0x40] sm:$0xff]  ;;  %v147_v28 = vld [vmem:[%s3179_s4 + $0x48] sm:$0xff]  ;;  %v54_v7 = vunpack.c.l.s4 %v2654_v6  ;;  %s2659_s30 = smov 56   ;;  %s2660_s15 = smov 80   ;;  %vm1650_vm13 = vcmask 195584  }
   0x8   :  { %2479 = vmatpush3.bf16.xpose.msk.msra.mxu0 %vm2763_vm1, %v2474_v8  ;;  %v2492_v26 = vpack.c.bf16 %v145_v25, %v144_v24  ;;  %v148_v29 = vld [vmem:[%s3179_s4 + $0x50] sm:$0xff]  ;;  %v2498_v30 = vpack.c.bf16 %v147_v28, %v146_v27  ;;  %v149_v31 = vld [vmem:[%s3179_s4 + $0x58] sm:$0xff]  ;;  %v2190_v49 = vld [vmem:[%s3177_s2] ss:$0 sm:$0xff]  ;;  %v56_v8 = vlaneseq  ;;  %s2661_s16 = smov 112   ;;  %s2662_s17 = smov 48  }
   0x9   :  { %2482 = vmatprep.subr.msk.bf16.mxu0 %vm2763_vm1, %v2480_v10  ;;  %v2504_v32 = vpack.c.bf16 %v149_v31, %v148_v29  ;;  %v2191_v52 = vld [vmem:[%s3178_s3] ss:$0 sm:$0xff]  ;;  %s2663_s18 = smov 72   ;;  %s2664_s0 = smov 104   ;;  %vm1647_vm14 = vcmask 130048   ;;  %vm1950_vm15 = vcmask 523264  }
   0xa   :  { %v2192_v60 = vld [vmem:[%s3180_s5] ss:$0 sm:$0xff]  ;;  %s2665_s19 = smov 40   ;;  %s2666_s20 = smov 8   ;;  %v1942_v4 = vld [vmem:[%s3187_s12 + $0x18] sm:$0xff] }
   0xb   :  { %v50_v9 = vld [vmem:[%s3176_s1] sm:$0x3]  ;;  %s2656_s1 = smov 64   ;;  %s2667_s21 = smov 16  }
   0xc   :  { %vm51_vm8 = vcmp.ne.f32.partialorder %v50_v9, 0.0  ;;  %s2668_s27 = smov 24  }
  0x10   :  { %2485 = vmatpush3.bf16.xpose.msk.msra.mxu0 %vm2763_vm1, %v2480_v10  ;;  %v55_v10 = vunpack.c.0.s8 %v54_v7 }
  0x11   :  { %2488 = vmatprep.subr.msk.bf16.mxu0 %vm2763_vm1, %v2486_v23 }
  0x18   :  { %2491 = vmatpush3.bf16.xpose.msk.msra.mxu0 %vm2763_vm1, %v2486_v23 }
  0x19   :  { %2494 = vmatprep.subr.msk.bf16.mxu0 %vm2763_vm1, %v2492_v26 }
  0x20   :  { %2497 = vmatpush3.bf16.xpose.msk.msra.mxu0 %vm2763_vm1, %v2492_v26 }
  0x21   :  { %2500 = vmatprep.subr.msk.bf16.mxu0 %vm2763_vm1, %v2498_v30 }
  0x28   :  { %2503 = vmatpush3.bf16.xpose.msk.msra.mxu0 %vm2763_vm1, %v2498_v30 }
  0x29   :  { %2506 = vmatprep.subr.msk.bf16.mxu0 %vm2763_vm1, %v2504_v32 }
  0x30   :  { %2509 = vmatpush3.bf16.xpose.msk.msra.mxu0 %vm2763_vm1, %v2504_v32 }
  0x31   :  { %2413 = vmatprep.subr.mxu0 %v2651_v59 }
  0x90   :  { %v82_v11 = vpop.xlane.xlu0 %81 }
  0x91   :  { %v87_v12 = vmul.f32 0.03125, %v82_v11  ;;  %v2871_v11 = vshrl.u32 %v56_v8, 7 }
  0x93   :  { %v89_v13 = vsub.f32 %v2750_v0, %v87_v12  ;;  %v58_v12 = vsub.s32 %v55_v10, %v2871_v11 }
  0x94   :  { %v85_v14 = vpop.xlane.xlu0 %84 }
  0x95   :  { %v88_v15 = vmul.f32 0.03125, %v85_v14  ;;  %v91_v16 = vmul.f32 %v89_v13, %v89_v13  ;;  %v126_v50 = vmul.f32 %v2190_v49, %v89_v13  ;;  %v2655_v13 = vmov 0  }
  0x96   :  { %v52_v14 = vsel %vm51_vm8, 1, %v2655_v13  ;;  %vm2073_vm8 = vcmask 1047559  }
  0x97   :  { %v90_v17 = vsub.f32 %v2755_v1, %v88_v15  ;;  %v93_v18 = vsel %vm79_vm0, %v91_v16, 0.0  ;;  %v59_v15 = vrot.slane %v52_v14, %v58_v12 }
  0x98   :  { %94 = vadd.xlane.f32.xlu1 %v93_v18 }
  0x99   :  { %v92_v19 = vmul.f32 %v90_v17, %v90_v17  ;;  %v127_v54 = vmul.f32 %v2190_v49, %v90_v17  ;;  %v67_v16 = vrot.slane %v59_v15, %v58_v12  ;;  %v60_v17 = vcombine.high %v59_v15, %v59_v15 }
  0x9b   :  { %v96_v20 = vsel %vm79_vm0, %v92_v19, 0.0  ;;  %vm75_vm9 = vcmp.ne.s32.totalorder %v67_v16, 0  ;;  %v74_v18 = vrot.slane %v60_v17, %v58_v12  ;;  %v435_v19 = vsub.s32 0, %v2871_v11 }
  0x9c   :  { %97 = vadd.xlane.f32.xlu1 %v96_v20  ;;  %v431_v20 = vsel %vm75_vm9, 1, %v2655_v13  ;;  %vm2076_vm9 = vcmask 254976  }
  0x9d   :  { %vm76_vm10 = vcmp.ne.s32.totalorder %v74_v18, 0  ;;  %v2875_v21 = vrot.slane %v431_v20, %v435_v19 }
  0x9e   :  { %v432_v22 = vsel %vm76_vm10, 1, %v2655_v13  ;;  %vm2088_vm10 = vcmask 517376  }
  0x9f   :  { %vm441_vm11 = vcmp.eq.s32.totalorder %v2875_v21, 1  ;;  %v2878_v24 = vrot.slane %v432_v22, %v435_v19 }
  0xa1   :  { %vm442_vm12 = vcmp.eq.s32.totalorder %v2878_v24, 1 }
 0x125   :  { %v95_v33 = vpop.xlane.xlu1 %94 }
 0x126   :  { %v100_v34 = vmul.f32 0.032258064, %v95_v33 }
 0x128   :  { %2579 = vrsqrt.f32 %v100_v34  ;;  %vm104_vm2 = vcmp.eq.f32.partialorder %v100_v34, inf  ;;  %v107_v39 = vand.u32 2147483648, %v100_v34  ;;  %vm106_vm3 = vcmp.eq.f32.partialorder %v100_v34, 0.0 }
 0x129   :  { %v98_v35 = vpop.xlane.xlu1 %97 }
 0x12a   :  { %v101_v36 = vmul.f32 0.032258064, %v98_v35 }
 0x12c   :  { %2581 = vrsqrt.f32 %v101_v36  ;;  %vm111_vm4 = vcmp.eq.f32.partialorder %v101_v36, inf  ;;  %v114_v45 = vand.u32 2147483648, %v101_v36  ;;  %vm113_vm5 = vcmp.eq.f32.partialorder %v101_v36, 0.0 }
 0x132   :  { %v2580_v37 = vpop.eup %2579 }
 0x133   :  { %v103_v38 = vmul.f32 %v2580_v37, %v100_v34 }
 0x135   :  { %v105_v40 = vsel %vm104_vm2, %v100_v34, %v103_v38  ;;  %vm2547_vm2 = vmpackc.low %vm1950_vm15, %vm1950_vm15 }
 0x136   :  { %v2582_v41 = vpop.eup %2581  ;;  %v108_v42 = vsel %vm106_vm3, %v107_v39, %v105_v40 }
 0x137   :  { %v110_v43 = vmul.f32 %v2582_v41, %v101_v36  ;;  %v116_v44 = vadd.f32 1e-06, %v108_v42 }
 0x139   :  { %v112_v46 = vsel %vm111_vm4, %v101_v36, %v110_v43  ;;  %2583 = vrcp.f32 %v116_v44 }
 0x13a   :  { %v115_v47 = vsel %vm113_vm5, %v114_v45, %v112_v46 }
 0x13b   :  { %v117_v48 = vadd.f32 1e-06, %v115_v47 }
 0x13d   :  { %2585 = vrcp.f32 %v117_v48 }
 0x143   :  { %v2584_v51 = vpop.eup %2583 }
 0x144   :  { %v128_v53 = vmul.f32 %v2584_v51, %v126_v50 }
 0x146   :  { %v136_v55 = vadd.f32 %v2191_v52, %v128_v53 }
 0x147   :  { %v2586_v56 = vpop.eup %2585 }
 0x148   :  { %v129_v57 = vmul.f32 %v2586_v56, %v127_v54  ;;  %2350 = vmatprep.mubr.msk.f32.mxu0 %vm79_vm0, %v136_v55 }
 0x14a   :  { %v137_v58 = vadd.f32 %v2191_v52, %v129_v57 }
 0x14c   :  { %2351 = vmatmul.mubr.msk.f32.vlgmr.msra.gmra.mrb[0].mxu0 %vm79_vm0, %v137_v58 }
 0x14d   :  { %2415 = vmatprep.mubr.msk.f32.mxu0 %vm2652_vm6, %v2651_v59 }
 0x21f   :  { %v2352_v61 = vpop.f32.mrb[0].mxu0 }
 0x220   :  { %v2848_v62 = vadd.f32 %v2352_v61, %v2192_v60  ;;  %v265_v63 = vpop.f32.mrb[1].mxu0 }
 0x221   :  { %v2850_v2 = vadd.f32 %v2192_v60, %v265_v63 }
 0x222   :  { %353 = vrot.lane.b32.xlu1 %v2848_v62, %s2653_s26 }
 0x223   :  { %275 = vrot.lane.b32.xlu0 %v2850_v2, %s2653_s26 }
 0x294   :  { %v354_v5 = vpop.permute.xlu1 %353 }
 0x295   :  { %v276_v3 = vpop.permute.xlu0 %275 }
 0x296   :  { %2354 = vmatpush3.xpose.msk.msra.mxu1 %vm277_vm7, %v276_v3 }
 0x297   :  { %2358 = vmatprep.subr.mxu1 %v2651_v59 }
 0x299   :  { %2356 = vmatmul.mubr.msk.f32.vlgmr.msra.gmra.mrb[0].mxu1 %vm277_vm7, %v2850_v2 }
 0x29a   :  { %2359 = vmatpush3.xpose.msk.msra.mxu1 %vm277_vm7, %v354_v5  ;;  %2360 = vmatprep.mubr.msk.f32.mxu1 %vm2652_vm6, %v2651_v59 }
 0x29b   :  { %2363 = vmatprep.subr.mxu1 %v2651_v59 }
 0x29d   :  { %2361 = vmatmul.mubr.msk.f32.vlgmr.msra.gmra.mrb[2].mxu1 %vm277_vm7, %v2848_v62 }
 0x29e   :  { %2365 = vmatprep.mubr.msk.f32.mxu1 %vm2652_vm6, %v2651_v59 }
 0x36c   :  { %v348_v23 = vpop.f32.mrb[0].mxu1 }
 0x36d   :  { %v429_v25 = vmul.f32 0.35355338, %v348_v23  ;;  %v2357_v26 = vpop.f32.mrb[1].mxu1 }
 0x36f   :  { %v443_v27 = vsel %vm441_vm11, %v429_v25, -1e+09 }
 0x370   :  { %v425_v28 = vpop.f32.mrb[2].mxu1  ;;  %v445_v29 = vsel %vm277_vm7, %v443_v27, -inf }
 0x371   :  { %v430_v30 = vmul.f32 0.35355338, %v425_v28  ;;  %446 = vmax.xlane.f32.xlu1 %v445_v29  ;;  %v2362_v31 = vpop.f32.mrb[3].mxu1 }
 0x373   :  { %v444_v32 = vsel %vm442_vm12, %v430_v30, -1e+09 }
 0x374   :  { %v448_v33 = vsel %vm277_vm7, %v444_v32, -inf }
 0x375   :  { %449 = vmax.xlane.f32.xlu0 %v448_v33 }
 0x382   :  { %543 = vrot.lane.b32.xlu1 %v2848_v62, %s2656_s1 }
 0x386   :  { %621 = vrot.lane.b32.xlu1 %v2850_v2, %s2657_s28 }
 0x3fe   :  { %v447_v34 = vpop.xlane.xlu1 %446 }
 0x3ff   :  { %v451_v35 = vsub.f32 %v443_v27, %v447_v34 }
 0x401   :  { %v453_v36 = vmul.f32 1.442695, %v451_v35 }
 0x402   :  { %v450_v37 = vpop.xlane.xlu0 %449  ;;  %v544_v44 = vpop.permute.xlu1 %543 }
 0x403   :  { %2587 = vpow2.f32 %v453_v36  ;;  %v452_v38 = vsub.f32 %v444_v32, %v450_v37 }
 0x405   :  { %v455_v39 = vmul.f32 1.442695, %v452_v38 }
 0x406   :  { %v622_v45 = vpop.permute.xlu1 %621 }
 0x407   :  { %2589 = vpow2.f32 %v455_v39 }
 0x40d   :  { %v2588_v40 = vpop.eup %2587 }
 0x40e   :  { %v457_v41 = vsel %vm277_vm7, %v2588_v40, 0.0 }
 0x40f   :  { %458 = vadd.xlane.f32.xlu0 %v457_v41 }
 0x411   :  { %v2590_v42 = vpop.eup %2589 }
 0x412   :  { %v460_v43 = vsel %vm277_vm7, %v2590_v42, 0.0 }
 0x413   :  { %461 = vadd.xlane.f32.xlu1 %v460_v43 }
 0x424   :  { %619 = vrot.lane.b32.xlu1 %v2850_v2, %s2658_s29 }
 0x425   :  { %467 = vrot.lane.b32.xlu0 %v2850_v2, %s2656_s1 }
 0x428   :  { %697 = vrot.lane.b32.xlu1 %v2848_v62, %s2658_s29 }
 0x429   :  { %699 = vrot.lane.b32.xlu0 %v2848_v62, %s2657_s28 }
 0x49c   :  { %v459_v46 = vpop.xlane.xlu0 %458 }
 0x49d   :  { %2591 = vrcp.f32 %v459_v46 }
 0x4a0   :  { %v462_v47 = vpop.xlane.xlu1 %461  ;;  %v468_v48 = vpop.permute.xlu0 %467 }
 0x4a1   :  { %2593 = vrcp.f32 %v462_v47  ;;  %2364 = vmatpush3.msra.mxu1 %v468_v48 }
 0x4a2   :  { %2368 = vmatprep.subr.mxu1 %v2651_v59 }
 0x4a4   :  { %v620_v53 = vpop.permute.xlu1 %619  ;;  %v700_v54 = vpop.permute.xlu0 %699 }
 0x4a7   :  { %v2592_v49 = vpop.eup %2591 }
 0x4a8   :  { %v465_v50 = vmul.f32 %v2592_v49, %v2588_v40  ;;  %v698_v55 = vpop.permute.xlu1 %697 }
 0x4aa   :  { %2366 = vmatmul.mubr.msk.f32.vlgmr.msra.gmra.mrb[4].mxu1 %vm277_vm7, %v465_v50 }
 0x4ab   :  { %v2594_v51 = vpop.eup %2593  ;;  %2369 = vmatpush3.msra.mxu1 %v544_v44  ;;  %2370 = vmatprep.mubr.msk.f32.mxu1 %vm2652_vm6, %v2651_v59 }
 0x4ac   :  { %v466_v52 = vmul.f32 %v2594_v51, %v2590_v42  ;;  %2373 = vmatprep.subr.mxu1 %v2651_v59 }
 0x4ae   :  { %2371 = vmatmul.mubr.msk.f32.vlgmr.msra.gmra.mrb[6].mxu1 %vm277_vm7, %v466_v52 }
 0x4af   :  { %2375 = vmatprep.mubr.msk.f32.mxu1 %vm2652_vm6, %v2651_v59 }
 0x4b2   :  { %2374 = vmatpush3.xpose.msk.msra.mxu1 %vm277_vm7, %v622_v45 }
 0x4b3   :  { %2378 = vmatprep.subr.mxu1 %v2651_v59 }
 0x4b5   :  { %2376 = vmatmul.mubr.msk.f32.vlgmr.msra.gmra.mrb[8].mxu1 %vm277_vm7, %v620_v53 }
 0x4b6   :  { %2379 = vmatpush3.xpose.msk.msra.mxu1 %vm277_vm7, %v700_v54  ;;  %2380 = vmatprep.mubr.msk.f32.mxu1 %vm2652_vm6, %v2651_v59 }
 0x4b7   :  { %2383 = vmatprep.subr.mxu1 %v2651_v59 }
 0x4b9   :  { %2381 = vmatmul.mubr.msk.f32.vlgmr.msra.gmra.mrb[10].mxu1 %vm277_vm7, %v698_v55 }
 0x4ba   :  { %2385 = vmatprep.mubr.msk.f32.mxu1 %vm2652_vm6, %v2651_v59 }
 0x57d   :  { %v2915_v56 = vpop.f32.mrb[4].mxu1 }
 0x57e   :  { %v2367_v57 = vpop.f32.mrb[5].mxu1 }
 0x581   :  { %v2917_v58 = vpop.f32.mrb[6].mxu1 }
 0x582   :  { %v2372_v60 = vpop.f32.mrb[7].mxu1 }
 0x588   :  { %v693_v61 = vpop.f32.mrb[8].mxu1 }
 0x589   :  { %v775_v63 = vmul.f32 0.35355338, %v693_v61  ;;  %v2377_v3 = vpop.f32.mrb[9].mxu1 }
 0x58b   :  { %v777_v5 = vsel %vm441_vm11, %v775_v63, -1e+09 }
 0x58c   :  { %v771_v6 = vpop.f32.mrb[10].mxu1  ;;  %v779_v7 = vsel %vm277_vm7, %v777_v5, -inf }
 0x58d   :  { %v776_v8 = vmul.f32 0.35355338, %v771_v6  ;;  %780 = vmax.xlane.f32.xlu0 %v779_v7  ;;  %v2382_v9 = vpop.f32.mrb[11].mxu1 }
 0x58f   :  { %v778_v10 = vsel %vm442_vm12, %v776_v8, -1e+09 }
 0x590   :  { %v782_v12 = vsel %vm277_vm7, %v778_v10, -inf }
 0x591   :  { %783 = vmax.xlane.f32.xlu1 %v782_v12 }
 0x5a2   :  { %877 = vrot.lane.b32.xlu1 %v2848_v62, %s2659_s30 }
 0x5a6   :  { %955 = vrot.lane.b32.xlu1 %v2850_v2, %s2660_s15 }
 0x5aa   :  { %953 = vrot.lane.b32.xlu1 %v2850_v2, %s2661_s16 }
 0x5ae   :  { %1031 = vrot.lane.b32.xlu1 %v2848_v62, %s2661_s16 }
 0x61a   :  { %v781_v13 = vpop.xlane.xlu0 %780 }
 0x61b   :  { %v785_v14 = vsub.f32 %v777_v5, %v781_v13 }
 0x61d   :  { %v787_v15 = vmul.f32 1.442695, %v785_v14 }
 0x61e   :  { %v784_v16 = vpop.xlane.xlu1 %783 }
 0x61f   :  { %2595 = vpow2.f32 %v787_v15  ;;  %v786_v17 = vsub.f32 %v778_v10, %v784_v16 }
 0x621   :  { %v789_v18 = vmul.f32 1.442695, %v786_v17 }
 0x622   :  { %v878_v28 = vpop.permute.xlu1 %877 }
 0x623   :  { %2597 = vpow2.f32 %v789_v18 }
 0x626   :  { %v956_v32 = vpop.permute.xlu1 %955 }
 0x629   :  { %v2596_v19 = vpop.eup %2595 }
 0x62a   :  { %v791_v20 = vsel %vm277_vm7, %v2596_v19, 0.0  ;;  %v954_v34 = vpop.permute.xlu1 %953 }
 0x62b   :  { %792 = vadd.xlane.f32.xlu0 %v791_v20 }
 0x62d   :  { %v2598_v22 = vpop.eup %2597 }
 0x62e   :  { %v794_v23 = vsel %vm277_vm7, %v2598_v22, 0.0  ;;  %v1032_v36 = vpop.permute.xlu1 %1031 }
 0x62f   :  { %795 = vadd.xlane.f32.xlu0 %v794_v23 }
 0x645   :  { %801 = vrot.lane.b32.xlu0 %v2850_v2, %s2659_s30 }
 0x649   :  { %1033 = vrot.lane.b32.xlu0 %v2848_v62, %s2660_s15 }
 0x6b8   :  { %v793_v25 = vpop.xlane.xlu0 %792 }
 0x6b9   :  { %2599 = vrcp.f32 %v793_v25 }
 0x6bc   :  { %v796_v26 = vpop.xlane.xlu0 %795 }
 0x6bd   :  { %2601 = vrcp.f32 %v796_v26 }
 0x6c0   :  { %v802_v27 = vpop.permute.xlu0 %801 }
 0x6c1   :  { %2384 = vmatpush3.msra.mxu1 %v802_v27 }
 0x6c2   :  { %2388 = vmatprep.subr.mxu1 %v2651_v59 }
 0x6c3   :  { %v2600_v29 = vpop.eup %2599 }
 0x6c4   :  { %v799_v30 = vmul.f32 %v2600_v29, %v2596_v19  ;;  %v1034_v35 = vpop.permute.xlu0 %1033 }
 0x6c6   :  { %2386 = vmatmul.mubr.msk.f32.vlgmr.msra.gmra.mrb[12].mxu1 %vm277_vm7, %v799_v30 }
 0x6c7   :  { %v2602_v31 = vpop.eup %2601  ;;  %2389 = vmatpush3.msra.mxu1 %v878_v28  ;;  %2390 = vmatprep.mubr.msk.f32.mxu1 %vm2652_vm6, %v2651_v59 }
 0x6c8   :  { %v800_v33 = vmul.f32 %v2602_v31, %v2598_v22  ;;  %2393 = vmatprep.subr.mxu1 %v2651_v59 }
 0x6ca   :  { %2391 = vmatmul.mubr.msk.f32.vlgmr.msra.gmra.mrb[14].mxu1 %vm277_vm7, %v800_v33 }
 0x6cb   :  { %2395 = vmatprep.mubr.msk.f32.mxu1 %vm2652_vm6, %v2651_v59 }
 0x6ce   :  { %2394 = vmatpush3.xpose.msk.msra.mxu1 %vm277_vm7, %v956_v32 }
 0x6cf   :  { %2398 = vmatprep.subr.mxu1 %v2651_v59 }
 0x6d1   :  { %2396 = vmatmul.mubr.msk.f32.vlgmr.msra.gmra.mrb[16].mxu1 %vm277_vm7, %v954_v34 }
 0x6d2   :  { %2399 = vmatpush3.xpose.msk.msra.mxu1 %vm277_vm7, %v1034_v35  ;;  %2400 = vmatprep.mubr.msk.f32.mxu1 %vm2652_vm6, %v2651_v59 }
 0x6d3   :  { %2403 = vmatprep.subr.mxu1 %v2651_v59 }
 0x6d5   :  { %2401 = vmatmul.mubr.msk.f32.vlgmr.msra.gmra.mrb[18].mxu1 %vm277_vm7, %v1032_v36 }
 0x6d6   :  { %2405 = vmatprep.mubr.msk.f32.mxu1 %vm2652_vm6, %v2651_v59 }
 0x799   :  { %v2951_v37 = vpop.f32.mrb[12].mxu1 }
 0x79a   :  { %v2387_v38 = vpop.f32.mrb[13].mxu1 }
 0x79d   :  { %v2953_v39 = vpop.f32.mrb[14].mxu1 }
 0x79e   :  { %v2392_v40 = vpop.f32.mrb[15].mxu1 }
 0x7a4   :  { %v1027_v41 = vpop.f32.mrb[16].mxu1 }
 0x7a5   :  { %v1109_v42 = vmul.f32 0.35355338, %v1027_v41  ;;  %v2397_v43 = vpop.f32.mrb[17].mxu1 }
 0x7a7   :  { %v1111_v44 = vsel %vm441_vm11, %v1109_v42, -1e+09 }
 0x7a8   :  { %v1105_v45 = vpop.f32.mrb[18].mxu1  ;;  %v1113_v46 = vsel %vm277_vm7, %v1111_v44, -inf }
 0x7a9   :  { %v1110_v47 = vmul.f32 0.35355338, %v1105_v45  ;;  %1114 = vmax.xlane.f32.xlu0 %v1113_v46  ;;  %v2402_v48 = vpop.f32.mrb[19].mxu1 }
 0x7aa   :  { %v1653_v48 = vld [vmem:[%s3181_s6] sm:$0xff] }
 0x7ab   :  { %v1112_v49 = vsel %vm442_vm12, %v1110_v47, -1e+09 }
 0x7ac   :  { %v1116_v50 = vsel %vm277_vm7, %v1112_v49, -inf }
 0x7ad   :  { %1117 = vmax.xlane.f32.xlu1 %v1116_v50  ;;  %v1655_v50 = vld [vmem:[%s3181_s6 + $0x10] sm:$0xff] }
 0x7be   :  { %1211 = vrot.lane.b32.xlu1 %v2848_v62, %s2662_s17 }
 0x7c2   :  { %1289 = vrot.lane.b32.xlu1 %v2850_v2, %s2663_s18 }
 0x7c6   :  { %1367 = vrot.lane.b32.xlu1 %v2848_v62, %s2663_s18 }
 0x7ca   :  { %1365 = vrot.lane.b32.xlu1 %v2848_v62, %s2664_s0 }
 0x836   :  { %v1115_v51 = vpop.xlane.xlu0 %1114 }
 0x837   :  { %v1119_v52 = vsub.f32 %v1111_v44, %v1115_v51  ;;  %v1656_v51 = vld [vmem:[%s3181_s6 + $0x18] sm:$0xff] }
 0x839   :  { %v1121_v53 = vmul.f32 1.442695, %v1119_v52  ;;  %v2516_v52 = vpack.c.bf16 %v1656_v51, %v1655_v50 }
 0x83a   :  { %v1118_v54 = vpop.xlane.xlu1 %1117 }
 0x83b   :  { %2603 = vpow2.f32 %v1121_v53  ;;  %v1120_v63 = vsub.f32 %v1112_v49, %v1118_v54 }
 0x83d   :  { %v1123_v3 = vmul.f32 1.442695, %v1120_v63 }
 0x83e   :  { %v1212_v55 = vpop.permute.xlu1 %1211 }
 0x83f   :  { %2605 = vpow2.f32 %v1123_v3 }
 0x842   :  { %v1290_v57 = vpop.permute.xlu1 %1289 }
 0x843   :  { %2414 = vmatpush3.xpose.msk.msra.mxu0 %vm277_vm7, %v1290_v57 }
 0x844   :  { %2423 = vmatprep.subr.mxu0 %v2651_v59 }
 0x845   :  { %v2604_v60 = vpop.eup %2603 }
 0x846   :  { %v1125_v61 = vsel %vm277_vm7, %v2604_v60, 0.0  ;;  %v1368_v15 = vpop.permute.xlu1 %1367 }
 0x847   :  { %1126 = vadd.xlane.f32.xlu0 %v1125_v61 }
 0x849   :  { %v2606_v5 = vpop.eup %2605 }
 0x84a   :  { %v1128_v6 = vsel %vm277_vm7, %v2606_v5, 0.0  ;;  %v1366_v17 = vpop.permute.xlu1 %1365 }
 0x85d   :  { %1135 = vrot.lane.b32.xlu0 %v2850_v2, %s2662_s17 }
 0x87c   :  { %1129 = vadd.xlane.f32.xlu0 %v1128_v6 }
 0x892   :  { %1287 = vrot.lane.b32.xlu0 %v2850_v2, %s2664_s0 }
 0x8d4   :  { %v1127_v7 = vpop.xlane.xlu0 %1126 }
 0x8d5   :  { %2607 = vrcp.f32 %v1127_v7 }
 0x8d8   :  { %v1136_v8 = vpop.permute.xlu0 %1135 }
 0x8d9   :  { %2404 = vmatpush3.msra.mxu1 %v1136_v8 }
 0x8da   :  { %2408 = vmatprep.subr.mxu1 %v2651_v59 }
 0x8df   :  { %v2608_v9 = vpop.eup %2607 }
 0x8e0   :  { %v1133_v10 = vmul.f32 %v2608_v9, %v2604_v60 }
 0x8e2   :  { %2406 = vmatmul.mubr.msk.f32.vlgmr.msra.gmra.mrb[20].mxu1 %vm277_vm7, %v1133_v10 }
 0x8e3   :  { %2409 = vmatpush3.msra.mxu1 %v1212_v55  ;;  %2410 = vmatprep.mubr.msk.f32.mxu1 %vm2652_vm6, %v2651_v59 }
 0x8e4   :  { %2418 = vmatprep.subr.mxu1 %v2651_v59 }
 0x909   :  { %v1130_v12 = vpop.xlane.xlu0 %1129 }
 0x90a   :  { %2609 = vrcp.f32 %v1130_v12 }
 0x90d   :  { %v1288_v13 = vpop.permute.xlu0 %1287 }
 0x90e   :  { %2416 = vmatmul.mubr.msk.f32.vlgmr.msra.gmra.mrb[2].mxu0 %vm277_vm7, %v1288_v13 }
 0x90f   :  { %2425 = vmatprep.mubr.msk.f32.mxu0 %vm2652_vm6, %v2651_v59 }
 0x914   :  { %v2610_v14 = vpop.eup %2609 }
 0x915   :  { %v1134_v16 = vmul.f32 %v2610_v14, %v2606_v5  ;;  %v2231_v14 = vld [vmem:[%s3182_s7] ss:$0 sm:$0xff] }
 0x917   :  { %2411 = vmatmul.mubr.msk.f32.vlgmr.msra.gmra.mrb[22].mxu1 %vm277_vm7, %v1134_v16 }
 0x918   :  { %2419 = vmatpush3.xpose.msk.msra.mxu1 %vm277_vm7, %v1368_v15  ;;  %2420 = vmatprep.mubr.msk.f32.mxu1 %vm2652_vm6, %v2651_v59 }
 0x919   :  { %2428 = vmatprep.subr.mxu1 %v2651_v59 }
 0x91b   :  { %2421 = vmatmul.mubr.msk.f32.vlgmr.msra.gmra.mrb[24].mxu1 %vm277_vm7, %v1366_v17 }
 0x91c   :  { %2430 = vmatprep.mubr.msk.f32.mxu1 %vm2652_vm6, %v2651_v59  ;;  %vm2069_vm6 = vcmask 1043459  }
 0x9b5   :  { %v1207_v18 = vpop.f32.mrb[20].mxu1 }
 0x9b6   :  { %v2407_v19 = vpop.f32.mrb[21].mxu1 }
 0x9e1   :  { %v1361_v20 = vpop.f32.mrb[2].mxu0 }
 0x9e2   :  { %v1443_v22 = vmul.f32 0.35355338, %v1361_v20  ;;  %v2417_v23 = vpop.f32.mrb[3].mxu0 }
 0x9e4   :  { %v1445_v25 = vsel %vm441_vm11, %v1443_v22, -1e+09  ;;  %vm2102_vm11 = vcmask 779776  }
 0x9e5   :  { %v1447_v26 = vsel %vm277_vm7, %v1445_v25, -inf }
 0x9e6   :  { %1448 = vmax.xlane.f32.xlu0 %v1447_v26 }
 0x9ea   :  { %v1283_v27 = vpop.f32.mrb[22].mxu1 }
 0x9eb   :  { %v2412_v28 = vpop.f32.mrb[23].mxu1 }
 0x9ee   :  { %v1439_v29 = vpop.f32.mrb[24].mxu1 }
 0x9ef   :  { %v1444_v30 = vmul.f32 0.35355338, %v1439_v29  ;;  %v2422_v31 = vpop.f32.mrb[25].mxu1 }
 0x9f0   :  { %v1817_v31 = vld [vmem:[%s3185_s10] sm:$0xff] }
 0x9f1   :  { %v1446_v32 = vsel %vm442_vm12, %v1444_v30, -1e+09  ;;  %vm2114_vm12 = vcmask 1042176  }
 0x9f2   :  { %v1450_v59 = vsel %vm277_vm7, %v1446_v32, -inf }
 0x9f3   :  { %1451 = vmax.xlane.f32.xlu1 %v1450_v59 }
 0xa04   :  { %1545 = vrot.lane.b32.xlu1 %v2848_v62, %s2665_s19 }
 0xa08   :  { %1623 = vrot.lane.b32.xlu1 %v2951_v37, %s2666_s20 }
 0xa0c   :  { %1625 = vrot.lane.b32.xlu1 %v2953_v39, %s2666_s20 }
 0xa10   :  { %1633 = vrot.lane.b32.xlu1 %v1283_v27, %s2667_s21 }
 0xa73   :  { %v1449_v21 = vpop.xlane.xlu0 %1448 }
 0xa74   :  { %v1453_v33 = vsub.f32 %v1445_v25, %v1449_v21  ;;  %v1819_v21 = vld [vmem:[%s3185_s10 + $0x10] sm:$0xff] }
 0xa76   :  { %v1455_v34 = vmul.f32 1.442695, %v1453_v33  ;;  %v1820_v33 = vld [vmem:[%s3185_s10 + $0x18] sm:$0xff] }
 0xa78   :  { %2611 = vpow2.f32 %v1455_v34  ;;  %v2528_v34 = vpack.c.bf16 %v1820_v33, %v1819_v21 }
 0xa80   :  { %v1452_v35 = vpop.xlane.xlu1 %1451 }
 0xa81   :  { %v1454_v24 = vsub.f32 %v1446_v32, %v1452_v35  ;;  %v1818_v32 = vld [vmem:[%s3185_s10 + $0x8] sm:$0xff]  ;;  %v1821_v35 = vld [vmem:[%s3185_s10 + $0x20] sm:$0xff] }
 0xa82   :  { %v2612_v36 = vpop.eup %2611  ;;  %v2522_v59 = vpack.c.bf16 %v1818_v32, %v1817_v31 }
 0xa83   :  { %v1457_v38 = vmul.f32 1.442695, %v1454_v24  ;;  %v1459_v40 = vsel %vm277_vm7, %v2612_v36, 0.0  ;;  %v1822_v24 = vld [vmem:[%s3185_s10 + $0x28] sm:$0xff] }
 0xa84   :  { %1460 = vadd.xlane.f32.xlu0 %v1459_v40  ;;  %v1546_v41 = vpop.permute.xlu1 %1545  ;;  %v1824_v40 = vld [vmem:[%s3185_s10 + $0x38] sm:$0xff] }
 0xa85   :  { %2613 = vpow2.f32 %v1457_v38  ;;  %2429 = vmatpush3.msra.mxu1 %v1546_v41  ;;  %v1823_v38 = vld [vmem:[%s3185_s10 + $0x30] sm:$0xff] }
 0xa86   :  { %2524 = vmatprep.subr.msk.bf16.mxu1 %vm2763_vm1, %v2522_v59  ;;  %v2540_v41 = vpack.c.bf16 %v1824_v40, %v1823_v38 }
 0xa88   :  { %v1624_v60 = vpop.permute.xlu1 %1623 }
 0xa89   :  { %v1645_v3 = vsel %vm277_vm7, %v2915_v56, %v1624_v60 }
 0xa8c   :  { %v1626_v63 = vpop.permute.xlu1 %1625 }
 0xa8d   :  { %v1646_v9 = vsel %vm277_vm7, %v2917_v58, %v1626_v63  ;;  %v2238_v63 = vld [vmem:[%s3183_s8] ss:$0 sm:$0xff] }
 0xa8f   :  { %v2614_v62 = vpop.eup %2613 }
 0xa90   :  { %v1462_v37 = vsel %vm277_vm7, %v2614_v62, 0.0  ;;  %v1634_v8 = vpop.permute.xlu1 %1633 }
 0xa91   :  { %1463 = vadd.xlane.f32.xlu0 %v1462_v37  ;;  %v1649_v10 = vsel %vm1647_vm14, %v1646_v9, %v1634_v8  ;;  %v1940_v37 = vld [vmem:[%s3187_s12 + $0x8] sm:$0xff] }
 0xaa7   :  { %1469 = vrot.lane.b32.xlu0 %v2850_v2, %s2665_s19  ;;  %v1654_v2 = vld [vmem:[%s3181_s6 + $0x8] sm:$0xff] }
 0xaa8   :  { %v2510_v49 = vpack.c.bf16 %v1654_v2, %v1653_v48 }
 0xaab   :  { %1631 = vrot.lane.b32.xlu0 %v1207_v18, %s2667_s21 }
 0xb11   :  { %v1461_v39 = vpop.xlane.xlu0 %1460 }
 0xb12   :  { %2615 = vrcp.f32 %v1461_v39  ;;  %v1941_v39 = vld [vmem:[%s3187_s12 + $0x10] sm:$0xff] }
 0xb1c   :  { %v2616_v43 = vpop.eup %2615 }
 0xb1d   :  { %v1467_v44 = vmul.f32 %v2616_v43, %v2612_v36  ;;  %v2534_v36 = vpack.c.bf16 %v1822_v24, %v1821_v35  ;;  %v2552_v43 = vpack.c.bf16 %v1942_v4, %v1941_v39 }
 0xb1e   :  { %v1464_v42 = vpop.xlane.xlu0 %1463 }
 0xb1f   :  { %2617 = vrcp.f32 %v1464_v42 }
 0xb22   :  { %v1470_v45 = vpop.permute.xlu0 %1469 }
 0xb23   :  { %2424 = vmatpush3.msra.mxu0 %v1470_v45 }
 0xb24   :  { %2426 = vmatmul.mubr.msk.f32.vlgmr.msra.gmra.mrb[4].mxu0 %vm277_vm7, %v1467_v44  ;;  %2512 = vmatprep.subr.msk.bf16.mxu0 %vm2763_vm1, %v2510_v49 }
 0xb26   :  { %v1632_v61 = vpop.permute.xlu0 %1631 }
 0xb27   :  { %v1648_v5 = vsel %vm1647_vm14, %v1645_v3, %v1632_v61 }
 0xb29   :  { %v2618_v46 = vpop.eup %2617 }
 0xb2a   :  { %v1468_v47 = vmul.f32 %v2618_v46, %v2614_v62  ;;  %2515 = vmatpush3.bf16.xpose.msk.msra.mxu0 %vm2763_vm1, %v2510_v49  ;;  %v1939_v62 = vld [vmem:[%s3187_s12] sm:$0xff] }
 0xb2b   :  { %2518 = vmatprep.subr.msk.bf16.mxu0 %vm2763_vm1, %v2516_v52  ;;  %v2546_v42 = vpack.c.bf16 %v1940_v37, %v1939_v62 }
 0xb2c   :  { %2431 = vmatmul.mubr.msk.f32.vlgmr.msra.gmra.mrb[26].mxu1 %vm277_vm7, %v1468_v47  ;;  %vm2071_vm7 = vcmask 1045509  }
 0xb2d   :  { %2527 = vmatpush3.bf16.xpose.msk.msra.mxu1 %vm2763_vm1, %v2522_v59 }
 0xb2e   :  { %2530 = vmatprep.subr.msk.bf16.mxu1 %vm2763_vm1, %v2528_v34 }
 0xb32   :  { %2521 = vmatpush3.bf16.xpose.msk.msra.mxu0 %vm2763_vm1, %v2516_v52 }
 0xb33   :  { %2548 = vmatprep.subr.msk.bf16.mxu0 %vm2547_vm2, %v2546_v42 }
 0xb35   :  { %2533 = vmatpush3.bf16.xpose.msk.msra.mxu1 %vm2763_vm1, %v2528_v34 }
 0xb36   :  { %2536 = vmatprep.subr.msk.bf16.mxu1 %vm2763_vm1, %v2534_v36 }
 0xb3d   :  { %2539 = vmatpush3.bf16.xpose.msk.msra.mxu1 %vm2763_vm1, %v2534_v36 }
 0xb3e   :  { %2542 = vmatprep.subr.msk.bf16.mxu1 %vm2763_vm1, %v2540_v41 }
 0xb45   :  { %2545 = vmatpush3.bf16.xpose.msk.msra.mxu1 %vm2763_vm1, %v2540_v41 }
 0xbf7   :  { %v1541_v53 = vpop.f32.mrb[4].mxu0 }
 0xbf8   :  { %1639 = vrot.lane.b32.xlu0 %v1541_v53, %s2668_s27  ;;  %v2427_v54 = vpop.f32.mrb[5].mxu0 }
 0xbff   :  { %v1617_v55 = vpop.f32.mrb[26].mxu1 }
 0xc00   :  { %1641 = vrot.lane.b32.xlu1 %v1617_v55, %s2668_s27  ;;  %v2432_v57 = vpop.f32.mrb[27].mxu1 }
 0xc6a   :  { %v1640_v6 = vpop.permute.xlu0 %1639 }
 0xc6b   :  { %v1651_v7 = vsel %vm1650_vm13, %v1648_v5, %v1640_v6  ;;  %v2239_v6 = vld [vmem:[%s3184_s9] ss:$0 sm:$0xff] }
 0xc6c   :  { %2441 = vmatprep.mubr.msk.f32.mxu0 %vm79_vm0, %v1651_v7 }
 0xc72   :  { %v1642_v12 = vpop.permute.xlu1 %1641 }
 0xc73   :  { %v1652_v13 = vsel %vm1650_vm13, %v1649_v10, %v1642_v12 }
 0xc74   :  { %2442 = vmatmul.mubr.msk.f32.vlgmr.msra.gmra.mrb[6].mxu0 %vm79_vm0, %v1652_v13 }
 0xc75   :  { %2551 = vmatpush3.bf16.xpose.msk.msra.mxu0 %vm2547_vm2, %v2546_v42 }
 0xc76   :  { %2554 = vmatprep.subr.msk.bf16.mxu0 %vm2547_vm2, %v2552_v43 }
 0xc7d   :  { %2557 = vmatpush3.bf16.xpose.msk.msra.mxu0 %vm2547_vm2, %v2552_v43 }
 0xd47   :  { %v2443_v56 = vpop.f32.mrb[6].mxu0 }
 0xd48   :  { %v1754_v15 = vadd.f32 %v2443_v56, %v2231_v14  ;;  %v1748_v16 = vpop.f32.mrb[7].mxu0 }
 0xd49   :  { %v1749_v17 = vadd.f32 %v2231_v14, %v1748_v16  ;;  %v2240_v14 = vld [vmem:[%s3186_s11] ss:$0 sm:$0xff]  ;;  %s2670_s11 = smov 32  }
 0xd4a   :  { %v3031_v18 = vadd.f32 %v1754_v15, %v2755_v1 }
 0xd4b   :  { %v3034_v19 = vadd.f32 %v1749_v17, %v2750_v0 }
 0xd4c   :  { %v1764_v58 = vsel %vm79_vm0, %v3031_v18, 0.0 }
 0xd4d   :  { %1765 = vadd.xlane.f32.xlu1 %v1764_v58  ;;  %v1761_v20 = vsel %vm79_vm0, %v3034_v19, 0.0 }
 0xd4e   :  { %1762 = vadd.xlane.f32.xlu0 %v1761_v20 }
 0xdda   :  { %v1766_v22 = vpop.xlane.xlu1 %1765 }
 0xddb   :  { %v1768_v23 = vmul.f32 0.03125, %v1766_v22  ;;  %v1763_v25 = vpop.xlane.xlu0 %1762  ;;  %v2669_v22 = vmov 1983009808  }
 0xddc   :  { %v1767_v26 = vmul.f32 0.03125, %v1763_v25 }
 0xddd   :  { %v3041_v27 = vsub.f32 %v3031_v18, %v1768_v23  ;;  %v2049_v23 = vunpack.c.l.s4 %v2669_v22 }
 0xdde   :  { %v3044_v1 = vsub.f32 %v3034_v19, %v1767_v26  ;;  %v2251_v26 = vld [vmem:[%s3188_s13] ss:$0 sm:$0xff]  ;;  %s2671_s13 = smov [#allocation2]  }
 0xddf   :  { %v1772_v29 = vmul.f32 %v3041_v27, %v3041_v27  ;;  %v1806_v8 = vmul.f32 %v2238_v63, %v3041_v27  ;;  %v2050_v25 = vunpack.c.0.s8 %v2049_v23  ;;  %s2182_s18 = sshll.u32 %s2671_s13, 4  ;;  %s2183_s18 = int_to_ptr.vmem [resolvable:$true] %s2182_s18 }
 0xde0   :  { %v1771_v0 = vmul.f32 %v3044_v1, %v3044_v1  ;;  %v1805_v3 = vmul.f32 %v2238_v63, %v3044_v1  ;;  %p2632_p1 = scmp.lt.s32.totalorder %s2183_s18, %s2183_s18 }
 0xde1   :  { %v1776_v30 = vsel %vm79_vm0, %v1772_v29, 0.0 }
 0xde2   :  { %v1773_v28 = vsel %vm79_vm0, %v1771_v0, 0.0  ;;  %v2053_v0 = vsub.s32 %v2050_v25, %v2871_v11 }
 0xde3   :  { %1774 = vadd.xlane.f32.xlu0 %v1773_v28 }
 0xde7   :  { %1777 = vadd.xlane.f32.xlu0 %v1776_v30 }
 0xe70   :  { %v1775_v44 = vpop.xlane.xlu0 %1774 }
 0xe71   :  { %v1779_v45 = vmul.f32 0.032258064, %v1775_v44 }
 0xe73   :  { %2619 = vrsqrt.f32 %v1779_v45  ;;  %vm1783_vm1 = vcmp.eq.f32.partialorder %v1779_v45, inf  ;;  %v1786_v49 = vand.u32 2147483648, %v1779_v45  ;;  %vm1785_vm3 = vcmp.eq.f32.partialorder %v1779_v45, 0.0 }
 0xe74   :  { %v1778_v46 = vpop.xlane.xlu0 %1777 }
 0xe75   :  { %v1780_v47 = vmul.f32 0.032258064, %v1778_v46 }
 0xe77   :  { %2621 = vrsqrt.f32 %v1780_v47  ;;  %vm1790_vm4 = vcmp.eq.f32.partialorder %v1780_v47, inf  ;;  %v1793_v55 = vand.u32 2147483648, %v1780_v47  ;;  %vm1792_vm5 = vcmp.eq.f32.partialorder %v1780_v47, 0.0 }
 0xe7d   :  { %v2620_v48 = vpop.eup %2619 }
 0xe7e   :  { %v1782_v2 = vmul.f32 %v2620_v48, %v1779_v45 }
 0xe80   :  { %v1784_v50 = vsel %vm1783_vm1, %v1779_v45, %v1782_v2 }
 0xe81   :  { %v2622_v51 = vpop.eup %2621  ;;  %v1787_v52 = vsel %vm1785_vm3, %v1786_v49, %v1784_v50 }
 0xe82   :  { %v1789_v53 = vmul.f32 %v2622_v51, %v1780_v47  ;;  %v1795_v54 = vadd.f32 1e-06, %v1787_v52 }
 0xe84   :  { %v1791_v57 = vsel %vm1790_vm4, %v1780_v47, %v1789_v53  ;;  %2623 = vrcp.f32 %v1795_v54 }
 0xe85   :  { %v1794_v60 = vsel %vm1792_vm5, %v1793_v55, %v1791_v57 }
 0xe86   :  { %v1796_v61 = vadd.f32 1e-06, %v1794_v60 }
 0xe88   :  { %2625 = vrcp.f32 %v1796_v61 }
 0xe8e   :  { %v2624_v5 = vpop.eup %2623 }
 0xe8f   :  { %v1807_v7 = vmul.f32 %v2624_v5, %v1805_v3 }
 0xe91   :  { %v1815_v9 = vadd.f32 %v2239_v6, %v1807_v7 }
 0xe92   :  { %v2626_v10 = vpop.eup %2625 }
 0xe93   :  { %v1808_v12 = vmul.f32 %v2626_v10, %v1806_v8  ;;  %2460 = vmatprep.mubr.msk.f32.mxu1 %vm79_vm0, %v1815_v9 }
 0xe95   :  { %v1816_v13 = vadd.f32 %v2239_v6, %v1808_v12 }
 0xe97   :  { %2461 = vmatmul.mubr.msk.f32.vlgmr.msra.gmra.mrb[28].mxu1 %vm79_vm0, %v1816_v13  ;;  %vm2067_vm0 = vcmask 1041409  }
 0xf6a   :  { %v2462_v56 = vpop.f32.mrb[28].mxu1 }
 0xf6b   :  { %v1934_v15 = vadd.f32 %v2462_v56, %v2240_v14  ;;  %v1928_v16 = vpop.f32.mrb[29].mxu1 }
 0xf6c   :  { %v1929_v17 = vadd.f32 %v2240_v14, %v1928_v16 }
 0xf6d   :  { %v1938_v20 = vmax.f32 %v1934_v15, 0.0 }
 0xf6e   :  { %v1937_v58 = vmax.f32 %v1929_v17, 0.0 }
 0xf70   :  { %2471 = vmatprep.mubr.msk.f32.mxu0 %vm1950_vm15, %v1937_v58 }
 0xf71   :  { %2472 = vmatmul.mubr.msk.f32.vlgmr.msra.gmra.mrb[8].mxu0 %vm1950_vm15, %v1938_v20 }
0x1044   :  { %v2473_v27 = vpop.f32.mrb[8].mxu0 }
0x1045   :  { %v2041_v1 = vadd.f32 %v2473_v27, %v2251_v26  ;;  %v2035_v28 = vpop.f32.mrb[9].mxu0 }
0x1046   :  { %v2036_v29 = vadd.f32 %v2251_v26, %v2035_v28 }
0x1047   :  { %v2045_v30 = vadd.f32 %v2041_v1, %v3031_v18 }
0x1048   :  { %v2044_v31 = vadd.f32 %v2036_v29, %v3034_v19 }
0x1049   :  { %v2061_v32 = vrot.slane %v2045_v30, %v2053_v0  ;;  %v2124_v59 = vcombine.high %v2045_v30, %v2045_v30 }
0x104a   :  { %v2054_v21 = vrot.slane %v2044_v31, %v2053_v0  ;;  %v2116_v33 = vcombine.high %v2044_v31, %v2044_v31 }
0x104b   :  { %v2131_v34 = vrot.slane %v2124_v59, %v2053_v0  ;;  %v2066_v35 = vrot.slane %v2061_v32, 7  ;;  %v2091_v24 = vcombine.high %v2061_v32, %v2061_v32 }
0x104c   :  { %v2078_v36 = vrot.slane %v2054_v21, 1  ;;  %v2090_v38 = vcombine.high %v2054_v21, %v2054_v21  ;;  %v2123_v40 = vrot.slane %v2116_v33, %v2053_v0 }
0x104d   :  { %v2068_v11 = vsel %vm2067_vm0, %v2066_v35, %v2054_v21  ;;  %v2134_v41 = vrot.slane %v2131_v34, 7  ;;  %v2094_v18 = vrot.slane %v2091_v24, 7  ;;  %v2153_v62 = vcombine.high %v2131_v34, %v2131_v34 }
0x104e   :  { %v2104_v19 = vrot.slane %v2090_v38, 1  ;;  %v2141_v37 = vrot.slane %v2123_v40, 1  ;;  %v2152_v39 = vcombine.high %v2123_v40, %v2123_v40  ;;  %v2081_v42 = vsel %vm2067_vm0, %v2061_v32, %v2078_v36 }
0x104f   :  { %v2135_v4 = vsel %vm2067_vm0, %v2134_v41, %v2123_v40  ;;  %v2082_v43 = vsel %vm2069_vm6, %v2061_v32, %v2081_v42  ;;  %v2095_v44 = vsel %vm2067_vm0, %v2094_v18, %v2090_v38  ;;  %v2156_v45 = vrot.slane %v2153_v62, 7 }
0x1050   :  { %v2083_v46 = vsel %vm2071_vm7, %v2061_v32, %v2082_v43  ;;  %v2096_v47 = vsel %vm2069_vm6, %v2094_v18, %v2095_v44  ;;  %v2107_v48 = vsel %vm2067_vm0, %v2091_v24, %v2104_v19  ;;  %v2144_v2 = vsel %vm2067_vm0, %v2131_v34, %v2141_v37 }
0x1051   :  { %v2084_v49 = vsel %vm2073_vm8, %v2061_v32, %v2083_v46  ;;  %v2097_v50 = vsel %vm2071_vm7, %v2094_v18, %v2096_v47  ;;  %v2108_v51 = vsel %vm2069_vm6, %v2091_v24, %v2107_v48  ;;  %v2145_v52 = vsel %vm2069_vm6, %v2131_v34, %v2144_v2 }
0x1052   :  { %2085 = vrot.lane.b32.xlu0 %v2084_v49, %s2670_s11  ;;  %v2098_v53 = vsel %vm2073_vm8, %v2094_v18, %v2097_v50  ;;  %v2109_v54 = vsel %vm2071_vm7, %v2091_v24, %v2108_v51  ;;  %v2146_v55 = vsel %vm2071_vm7, %v2131_v34, %v2145_v52  ;;  %v2157_v57 = vsel %vm2067_vm0, %v2156_v45, %v2152_v39 }
0x1053   :  { %2099 = vrot.lane.b32.xlu1 %v2098_v53, %s2656_s1  ;;  %v2110_v60 = vsel %vm2073_vm8, %v2091_v24, %v2109_v54  ;;  %v2147_v61 = vsel %vm2073_vm8, %v2131_v34, %v2146_v55  ;;  %v2158_v63 = vsel %vm2069_vm6, %v2156_v45, %v2157_v57  ;;  %v2165_v3 = vrot.slane %v2152_v39, 1 }
0x1054   :  { %v2159_v5 = vsel %vm2071_vm7, %v2156_v45, %v2158_v63  ;;  %v2070_v6 = vsel %vm2069_vm6, %v2066_v35, %v2068_v11  ;;  %v2136_v7 = vsel %vm2069_vm6, %v2134_v41, %v2135_v4 }
0x1055   :  { %v2160_v8 = vsel %vm2073_vm8, %v2156_v45, %v2159_v5  ;;  %v2168_v9 = vsel %vm2067_vm0, %v2153_v62, %v2165_v3  ;;  %v2072_v10 = vsel %vm2071_vm7, %v2066_v35, %v2070_v6  ;;  %v2137_v12 = vsel %vm2071_vm7, %v2134_v41, %v2136_v7 }
0x1056   :  { %2111 = vrot.lane.b32.xlu0 %v2110_v60, %s2653_s26  ;;  %v2169_v13 = vsel %vm2069_vm6, %v2153_v62, %v2168_v9  ;;  %v2074_v14 = vsel %vm2073_vm8, %v2066_v35, %v2072_v10  ;;  %v2138_v56 = vsel %vm2073_vm8, %v2134_v41, %v2137_v12 }
0x1057   :  { %2148 = vrot.lane.b32.xlu1 %v2147_v61, %s2670_s11  ;;  %v2170_v15 = vsel %vm2071_vm7, %v2153_v62, %v2169_v13  ;;  %2077 = vst.msk [vmem:[#allocation2] sm:$0x3] %vm2076_vm9, %v2074_v14  ;;  %2140 = vst.msk [vmem:[#allocation2 + $0x2] sm:$0x3] %vm2076_vm9, %v2138_v56 }
0x1058   :  { %v2171_v16 = vsel %vm2073_vm8, %v2153_v62, %v2170_v15 }
0x105b   :  { %2161 = vrot.lane.b32.xlu1 %v2160_v8, %s2656_s1  ;;  %s2627_s1 = scalar_lea.vmem %s2183_s18, 64 }
0x105c   :  { %p2628_p0 = scmp.ne.s32.totalorder %s2183_s18, %s2627_s1  ;;  %p2633_p2 = scmp.lt.s32.totalorder %s2627_s1, %s2627_s1 }
0x105e   :  { %p2634_p3 = por %p2633_p2, %p2632_p1 }
0x105f   :  { %2172 = vrot.lane.b32.xlu1 %v2171_v16, %s2653_s26 }
0x1060   :  { %p2635_p4 = pnand %p2634_p3, %p2628_p0 }
0x10c4   :  { %v2086_v17 = vpop.permute.xlu0 %2085 }
0x10c5   :  { %2089 = vst.msk [vmem:[#allocation2] sm:$0x3] %vm2088_vm10, %v2086_v17  ;;  %v2100_v58 = vpop.permute.xlu1 %2099 }
0x10c6   :  { %2103 = vst.msk [vmem:[#allocation2] sm:$0x3] %vm2102_vm11, %v2100_v58 }
0x10c8   :  { %v2112_v20 = vpop.permute.xlu0 %2111 }
0x10c9   :  { %2115 = vst.msk [vmem:[#allocation2] sm:$0x3] %vm2114_vm12, %v2112_v20  ;;  %v2149_v22 = vpop.permute.xlu1 %2148 }
0x10ca   :  { %2151 = vst.msk [vmem:[#allocation2 + $0x2] sm:$0x3] %vm2088_vm10, %v2149_v22 }
0x10cd   :  { %v2162_v23 = vpop.permute.xlu1 %2161 }
0x10ce   :  { %2164 = vst.msk [vmem:[#allocation2 + $0x2] sm:$0x3] %vm2102_vm11, %v2162_v23 }
0x10d1   :  { %v2173_v25 = vpop.permute.xlu1 %2172 }
0x10d2   :  { %2175 = vst.msk [vmem:[#allocation2 + $0x2] sm:$0x3] %vm2114_vm12, %v2173_v25 }
0x10d3   :  { %2638 = shalt.err (!%p2635_p4)
}
0x10d4   :  { %s2639_s19 = scalar_lea.hbm %s3189_s14, 64 }
0x10d5   :  { %p2640_p5 = scmp.ne.s32.totalorder %s3189_s14, %s2639_s19  ;;  %p2643_p6 = scmp.lt.u32.totalorder %s2639_s19, %s3189_s14 }
0x10d7   :  { %p2645_p7 = pnand %p2643_p6, %p2640_p5 }
0x10d9   :  { %2648 = shalt.err (!%p2645_p7)
}
0x10da   :  { %2185 = dma.vmem_to_hbm [thread:$0]  %s2183_s18, 64, %s3189_s14, [#allocation3]  }
0x10db   :  { %2649 = dma.done.wait [#allocation3], 64  }
0x10dc   :  { %2650 = vsyncadd [#allocation3], 4294967232 }
0x10dd   :  { %2189 = vsyncpa [#allocation3], 1 }

</bundles_post_ra>
